<compile_context>
chip_gen: v7x
topology: tpu7x:2x2x1
jax: 0.10.0
libtpu: 0.0.40
codegen_flags: <defaults>
</compile_context>

<pallas_src>
import functools

import jax
import jax.numpy as jnp
from jax import lax
from jax.experimental import pallas as pl
from jax.experimental.pallas import tpu as pltpu


# ----------------------------------------------------------------------------- kernel
def up_se_kernel(x1_ref, x2_ref, up_ref, upcm_ref, mask_ref,
                 se1_ref, se2_ref,
                 w1_ref, b1_ref, g1_ref, be1_ref,
                 w2_ref, b2_ref, g2_ref, be2_ref,
                 o_ref, scr_ref, *, w_sp):
    nb, c1, p1 = x1_ref.shape
    _, c2, p2 = x2_ref.shape
    c_in = c1 + c2
    cout = o_ref.shape[1]
    groups = cout // 4
    cpg = cout // groups
    m0 = w_sp + 1                          # left zero-margin width of the padded slab

    up_t = up_ref[...]                     # (P1, P2) bf16 bilinear weights (transposed)
    up_cm = upcm_ref[...]                  # (1, P1)  f32  column means of upsample matrix
    masks = mask_ref[...]                  # (9, P2)  bf16 3x3 border-validity masks
    se1 = se1_ref[...]                     # (C_hid, C_in) f32
    se2 = se2_ref[...]                     # (C_in, C_hid) f32
    wc1 = w1_ref[...]                      # (Cout, 9*C_in) bf16
    wc2 = w2_ref[...]                      # (Cout, 9*Cout) bf16
    b1c, g1c, be1c = b1_ref[...], g1_ref[...], be1_ref[...]   # (Cout, 1) f32
    b2c, g2c, be2c = b2_ref[...], g2_ref[...], be2_ref[...]

    # Zero only the pad margins of the persistent slab; the interior is fully
    # overwritten before every conv.  Done every grid step (megacore-safe).
    cmax, plen = scr_ref.shape
    scr_ref[:, 0:m0] = jnp.zeros((cmax, m0), scr_ref.dtype)
    scr_ref[:, m0 + p2:] = jnp.zeros((cmax, plen - m0 - p2), scr_ref.dtype)

    def group_stat(col):
        # col: (Cout, 1) per-channel stat -> per-channel broadcast of its group mean
        # (contiguous groups of `cpg` channels).  Tiny sublane reduces, VPU/XLU only.
        parts = []
        for g in range(groups):
            gm = jnp.mean(col[g * cpg:(g + 1) * cpg, :], axis=0, keepdims=True)
            parts.append(jnp.broadcast_to(gm, (cpg, 1)))
        return jnp.concatenate(parts, axis=0)

    def conv3x3(cin, w_mat):
        # Conv input lives (bf16) in scr_ref[0:cin, m0:m0+p2]; margins are zero, so
        # vertical out-of-bounds taps read zeros.  Row-wrap of the +-1 lane shifts is
        # killed by the precomputed masks (redundant for dx==1, so skipped there).
        taps = []
        for dy in range(3):
            for dx in range(3):
                st = dy * w_sp + dx        # == m0 + (dy-1)*w_sp + (dx-1)
                tap = scr_ref[0:cin, st:st + p2]             # (cin, P2) bf16, lane-dense
                if dx != 1:
                    tap = tap * masks[(dy * 3 + dx):(dy * 3 + dx) + 1, :]
                taps.append(tap)
        patches = jnp.concatenate(taps, axis=0)              # (9*cin, P2) bf16
        return jnp.dot(w_mat, patches, preferred_element_type=jnp.float32)  # (Cout, P2)

    def gn_lrelu(y, gcol, bcol):
        # GroupNorm(Cout//4, Cout) + LeakyReLU(0.2) in (Cout, P2) lane-dense layout.
        mg = group_stat(jnp.mean(y, axis=1, keepdims=True))
        yc = y - mg
        vg = group_stat(jnp.mean(yc * yc, axis=1, keepdims=True))
        yn = yc * lax.rsqrt(vg + 1e-5) * gcol + bcol
        return jnp.maximum(yn, 0.2 * yn)

    for s in range(nb):                                      # nb samples per grid step
        x1c = x1_ref[s]                    # (C1, P1) f32, spatial in lanes
        x2c = x2_ref[s]                    # (C2, P2) f32, spatial in lanes

        # Bilinear upsample (align_corners=True): one bf16 MXU matmul.
        x1u = jnp.dot(x1c.astype(jnp.bfloat16), up_t,
                      preferred_element_type=jnp.float32)    # (C1, P2) f32

        # SELayer: squeeze (per-channel spatial mean as a column) -> fc -> ReLU -> fc
        # -> sigmoid.  The x1 half of the squeeze is computed exactly from f32 x1.
        m2 = jnp.mean(x2c, axis=1, keepdims=True)            # (C2, 1)
        m1 = jnp.sum(x1c * up_cm, axis=1, keepdims=True)     # (C1, 1)
        s_col = jnp.concatenate([m2, m1], axis=0)            # (C_in, 1), order = cat[x2,x1]
        h_col = jnp.maximum(
            jnp.dot(se1, s_col, preferred_element_type=jnp.float32), 0.0)
        gate = jax.nn.sigmoid(
            jnp.dot(se2, h_col, preferred_element_type=jnp.float32))  # (C_in, 1)

        # Gated concat([x2, x1_up]) written (bf16) straight into the padded slab.
        scr_ref[0:c2, m0:m0 + p2] = (x2c * gate[0:c2, :]).astype(jnp.bfloat16)
        scr_ref[c2:c_in, m0:m0 + p2] = (x1u * gate[c2:c_in, :]).astype(jnp.bfloat16)

        # DoubleConv2d: conv3x3 -> GroupNorm -> LeakyReLU, twice.
        a1 = gn_lrelu(conv3x3(c_in, wc1) + b1c, g1c, be1c)   # (Cout, P2)
        scr_ref[0:cout, m0:m0 + p2] = a1.astype(jnp.bfloat16)
        a2 = gn_lrelu(conv3x3(cout, wc2) + b2c, g2c, be2c)   # (Cout, P2)

        o_ref[s] = a2                      # lane-dense NC(H*W) store, 256 lanes


# ----------------------------------------------------------------------------- wrapper
def _bilinear_matrix(n_in, n_out):
    """1-D interpolation matrix for bilinear upsampling with align_corners=True."""
    if n_in == 1:
        return jnp.ones((n_out, 1), jnp.float32)
    src = jnp.arange(n_out, dtype=jnp.float32) * (n_in - 1) / (n_out - 1)
    i0 = jnp.clip(jnp.floor(src).astype(jnp.int32), 0, n_in - 2)
    frac = src - i0.astype(jnp.float32)
    rows = jnp.arange(n_out)
    m = jnp.zeros((n_out, n_in), jnp.float32)
    m = m.at[rows, i0].add(1.0 - frac)
    m = m.at[rows, i0 + 1].add(frac)
    return m


def up_se_pallas(x1, x2, params, samples_per_step=1):
    """x1: (N, C1, H1, W1) low-res features; x2: (N, C2, 2*H1, 2*W1) skip (both NCHW)."""
    N, C1, H1, W1 = x1.shape
    N2, C2, H2, W2 = x2.shape
    assert N2 == N and H2 == 2 * H1 and W2 == 2 * W1
    C_in = C1 + C2
    Cout = params["w1"].shape[0]
    assert params["w1"].shape[1] == C_in
    assert Cout % 4 == 0, "GroupNorm(Cout//4) assumes contiguous groups of 4 channels"
    P1, P2 = H1 * W1, H2 * W2

    # Keep >= 2 grid steps whenever possible so both v7x TensorCores get work; raise
    # samples_per_step on v5e/v6e (single TC) to amortize per-step overhead.
    nb = 1
    if samples_per_step > 1 and N % samples_per_step == 0 and N // samples_per_step >= 2:
        nb = samples_per_step

    # --- host-side constants / parameter repacking (all tiny, done once) ---
    u_h = _bilinear_matrix(H1, H2)                                      # (H2, H1)
    u_w = _bilinear_matrix(W1, W2)                                      # (W2, W1)
    up_full = jnp.einsum("ph,qw->pqhw", u_h, u_w).reshape(P2, P1)       # (P2, P1) f32
    up_t = up_full.T.astype(jnp.bfloat16)                               # (P1, P2) bf16
    up_cm = jnp.mean(up_full, axis=0, keepdims=True)                    # (1, P1)  f32
    # TODO(synk): separable row/col interpolation matmuls + spatial tiling for large H,W.

    # 3x3 "SAME" border-validity masks, one (1, P2) row per tap (dy, dx).
    yy = jnp.arange(H2)[:, None]
    xx = jnp.arange(W2)[None, :]
    mrows = []
    for dy in range(3):
        for dx in range(3):
            ok = ((yy + dy - 1 >= 0) & (yy + dy - 1 < H2) &
                  (xx + dx - 1 >= 0) & (xx + dx - 1 < W2))
            mrows.append(ok.reshape(1, P2))
    tap_masks = jnp.concatenate(mrows, axis=0).astype(jnp.bfloat16)     # (9, P2)

    # torch OIHW conv weights -> (Cout, (dy,dx,ci)-major 9*Cin) rows, bf16 MXU operands.
    w1r = jnp.transpose(params["w1"], (0, 2, 3, 1)).reshape(Cout, 9 * C_in).astype(jnp.bfloat16)
    w2r = jnp.transpose(params["w2"], (0, 2, 3, 1)).reshape(Cout, 9 * Cout).astype(jnp.bfloat16)
    col = lambda v: jnp.asarray(v, jnp.float32).reshape(-1, 1)
    b1c, g1c, be1c = col(params["b1"]), col(params["g1"]), col(params["be1"])
    b2c, g2c, be2c = col(params["b2"]), col(params["g2"]), col(params["be2"])
    se1 = jnp.asarray(params["se_w1"], jnp.float32)                     # (C_hid, C_in)
    se2 = jnp.asarray(params["se_w2"], jnp.float32)                     # (C_in, C_hid)
    C_hid = se1.shape[0]

    # NCHW kept; only metadata spatial-flatten reshapes (no wrapper transposes).
    x1f = x1.reshape(N, C1, P1).astype(jnp.float32)
    x2f = x2.reshape(N, C2, P2).astype(jnp.float32)
    # TODO(synk): keep activations bf16 end-to-end if the surrounding model allows it.

    c_max = max(C_in, Cout)
    pad_len = P2 + 2 * (W2 + 1)

    flops = N * (2 * C1 * P1 * P2                 # upsample matmul
                 + 2 * Cout * 9 * C_in * P2       # conv1 matmul
                 + 2 * Cout * 9 * Cout * P2       # conv2 matmul
                 + 4 * C_in * C_hid               # SE fcs
                 + 36 * Cout * P2 + 6 * C_in * P2)  # GN / LeakyReLU / gating
    bytes_acc = (4 * (N * C1 * P1 + N * C2 * P2 + N * Cout * P2)
                 + 2 * (P1 * P2 + 9 * P2 + 9 * C_in * Cout + 9 * Cout * Cout)
                 + 4 * (P1 + 2 * C_in * C_hid + 6 * Cout))
    cost = pl.CostEstimate(flops=int(flops),
                           transcendentals=int(N * (C_in + 2 * Cout)),
                           bytes_accessed=int(bytes_acc))

    def full(shape):
        return pl.BlockSpec(shape, lambda n: (0,) * len(shape))

    kernel = functools.partial(up_se_kernel, w_sp=W2)

    out = pl.pallas_call(
        kernel,
        out_shape=jax.ShapeDtypeStruct((N, Cout, P2), jnp.float32),
        grid=(N // nb,),
        in_specs=[
            pl.BlockSpec((nb, C1, P1), lambda n: (n, 0, 0)),   # x1 (NCHW, flat spatial)
            pl.BlockSpec((nb, C2, P2), lambda n: (n, 0, 0)),   # x2 (NCHW, flat spatial)
            full((P1, P2)),                                    # upsample weights (bf16)
            full((1, P1)),                                     # upsample column means
            full((9, P2)),                                     # 3x3 border masks (bf16)
            full((C_hid, C_in)),                               # SE fc1
            full((C_in, C_hid)),                               # SE fc2
            full((Cout, 9 * C_in)),                            # conv1 weight (bf16)
            full((Cout, 1)), full((Cout, 1)), full((Cout, 1)), # b1, gamma1, beta1
            full((Cout, 9 * Cout)),                            # conv2 weight (bf16)
            full((Cout, 1)), full((Cout, 1)), full((Cout, 1)), # b2, gamma2, beta2
        ],
        out_specs=pl.BlockSpec((nb, Cout, P2), lambda n: (n, 0, 0)),
        scratch_shapes=[pltpu.VMEM((c_max, pad_len), jnp.bfloat16)],
        compiler_params=pltpu.CompilerParams(dimension_semantics=("parallel",)),
        cost_estimate=cost,
    )(x1f, x2f, up_t, up_cm, tap_masks, se1, se2,
      w1r, b1c, g1c, be1c, w2r, b2c, g2c, be2c)
    return out.reshape(N, Cout, H2, W2)


# ----------------------------------------------------------------------------- reference
def up_se_reference(x1, x2, p):
    """Pure-JAX (f32) reference matching the PyTorch Up_se forward (NCHW)."""
    N, C1, H1, W1 = x1.shape
    u_h = _bilinear_matrix(H1, 2 * H1)
    u_w = _bilinear_matrix(W1, 2 * W1)
    x1u = jnp.einsum("ph,nchw->ncpw", u_h, x1)
    x1u = jnp.einsum("qw,ncpw->ncpq", u_w, x1u)
    x = jnp.concatenate([x2, x1u], axis=1)

    s = jnp.mean(x, axis=(2, 3))                         # SE squeeze
    h = jnp.maximum(s @ p["se_w1"].T, 0.0)
    g = jax.nn.sigmoid(h @ p["se_w2"].T)
    x = x * g[:, :, None, None]

    def conv(inp, w, b):
        y = lax.conv_general_dilated(inp, w, (1, 1), "SAME",
                                     dimension_numbers=("NCHW", "OIHW", "NCHW"))
        return y + b.reshape(1, -1, 1, 1)

    def gn_lrelu(y, gamma, beta, groups, eps=1e-5):
        n, c, hh, ww = y.shape
        yg = y.reshape(n, groups, c // groups, hh, ww)
        m = jnp.mean(yg, axis=(2, 3, 4), keepdims=True)
        v = jnp.mean((yg - m) ** 2, axis=(2, 3, 4), keepdims=True)
        yn = ((yg - m) / jnp.sqrt(v + eps)).reshape(n, c, hh, ww)
        yn = yn * gamma.reshape(1, -1, 1, 1) + beta.reshape(1, -1, 1, 1)
        return jnp.where(yn > 0, yn, 0.2 * yn)

    Cout = p["w1"].shape[0]
    y = conv(x, p["w1"], p["b1"])
    y = gn_lrelu(y, p["g1"], p["be1"], Cout // 4)
    y = conv(y, p["w2"], p["b2"])
    y = gn_lrelu(y, p["g2"], p["be2"], Cout // 4)
    return y


if __name__ == "__main__":
    # Up_se(in_channels=32, out_channels=16, se_reduction=16):
    # x1 (N,16,8,8) is upsampled to 16x16 and concatenated with x2 (N,16,16,16).
    N, C1, C2, Cout, H1, W1 = 2, 16, 16, 16, 8, 8
    C_in = C1 + C2
    C_hid = C_in // 16
    key = jax.random.PRNGKey(0)
    ks = jax.random.split(key, 12)
    params = {
        "w1": 0.2 * jax.random.normal(ks[0], (Cout, C_in, 3, 3), jnp.float32),
        "b1": 0.1 * jax.random.normal(ks[1], (Cout,), jnp.float32),
        "g1": 1.0 + 0.1 * jax.random.normal(ks[2], (Cout,), jnp.float32),
        "be1": 0.1 * jax.random.normal(ks[3], (Cout,), jnp.float32),
        "w2": 0.2 * jax.random.normal(ks[4], (Cout, Cout, 3, 3), jnp.float32),
        "b2": 0.1 * jax.random.normal(ks[5], (Cout,), jnp.float32),
        "g2": 1.0 + 0.1 * jax.random.normal(ks[6], (Cout,), jnp.float32),
        "be2": 0.1 * jax.random.normal(ks[7], (Cout,), jnp.float32),
        "se_w1": 3.0 * jax.random.normal(ks[8], (C_hid, C_in), jnp.float32),
        "se_w2": 3.0 * jax.random.normal(ks[9], (C_in, C_hid), jnp.float32),
    }
    x1 = jax.random.normal(ks[10], (N, C1, H1, W1), jnp.float32)
    x2 = jax.random.normal(ks[11], (N, C2, 2 * H1, 2 * W1), jnp.float32)

    out = jax.block_until_ready(up_se_pallas(x1, x2, params))
    ref = up_se_reference(x1, x2, params)
    assert out.shape == (N, Cout, 2 * H1, 2 * W1)
    err = float(jnp.max(jnp.abs(out - ref)))
    # Tolerance reflects bf16 MXU operands in the upsample / conv matmuls (f32 accum).
    if not jnp.allclose(out, ref, atol=5e-2, rtol=5e-2):
        raise AssertionError("mismatch vs reference, max abs diff %e" % err)
    print("KERNEL_OK")
</pallas_src>

<mosaic_0001>
module attributes {stable_mosaic.version = 11 : i64} {
  func.func @up_se_kernel(%arg0: i32, %arg1: memref<1x16x64xf32, #tpu.memory_space<vmem>>, %arg2: memref<1x16x256xf32, #tpu.memory_space<vmem>>, %arg3: memref<64x256xbf16, #tpu.memory_space<vmem>>, %arg4: memref<1x64xf32, #tpu.memory_space<vmem>>, %arg5: memref<9x256xbf16, #tpu.memory_space<vmem>>, %arg6: memref<2x32xf32, #tpu.memory_space<vmem>>, %arg7: memref<32x2xf32, #tpu.memory_space<vmem>>, %arg8: memref<16x288xbf16, #tpu.memory_space<vmem>>, %arg9: memref<16x1xf32, #tpu.memory_space<vmem>>, %arg10: memref<16x1xf32, #tpu.memory_space<vmem>>, %arg11: memref<16x1xf32, #tpu.memory_space<vmem>>, %arg12: memref<16x144xbf16, #tpu.memory_space<vmem>>, %arg13: memref<16x1xf32, #tpu.memory_space<vmem>>, %arg14: memref<16x1xf32, #tpu.memory_space<vmem>>, %arg15: memref<16x1xf32, #tpu.memory_space<vmem>>, %arg16: memref<1x16x256xf32, #tpu.memory_space<vmem>>, %arg17: memref<32x290xbf16, #tpu.memory_space<vmem>>) attributes {dimension_semantics = [#tpu.dimension_semantics<parallel>], iteration_bounds = array<i64: 2>, scalar_prefetch = 0 : i64, scratch_operands = 1 : i64, tpu.core_type = #tpu.core_type<tc>, window_params = [{transform_indices = @transform_0, window_bounds = array<i64: 1, 16, 64>}, {transform_indices = @transform_1, window_bounds = array<i64: 1, 16, 256>}, {pipeline_mode = #tpu.pipeline_mode<synchronous>, transform_indices = @transform_2, window_bounds = array<i64: 64, 256>}, {pipeline_mode = #tpu.pipeline_mode<synchronous>, transform_indices = @transform_3, window_bounds = array<i64: 1, 64>}, {pipeline_mode = #tpu.pipeline_mode<synchronous>, transform_indices = @transform_4, window_bounds = array<i64: 9, 256>}, {pipeline_mode = #tpu.pipeline_mode<synchronous>, transform_indices = @transform_5, window_bounds = array<i64: 2, 32>}, {pipeline_mode = #tpu.pipeline_mode<synchronous>, transform_indices = @transform_6, window_bounds = array<i64: 32, 2>}, {pipeline_mode = #tpu.pipeline_mode<synchronous>, transform_indices = @transform_7, window_bounds = array<i64: 16, 288>}, {pipeline_mode = #tpu.pipeline_mode<synchronous>, transform_indices = @transform_8, window_bounds = array<i64: 16, 1>}, {pipeline_mode = #tpu.pipeline_mode<synchronous>, transform_indices = @transform_9, window_bounds = array<i64: 16, 1>}, {pipeline_mode = #tpu.pipeline_mode<synchronous>, transform_indices = @transform_10, window_bounds = array<i64: 16, 1>}, {pipeline_mode = #tpu.pipeline_mode<synchronous>, transform_indices = @transform_11, window_bounds = array<i64: 16, 144>}, {pipeline_mode = #tpu.pipeline_mode<synchronous>, transform_indices = @transform_12, window_bounds = array<i64: 16, 1>}, {pipeline_mode = #tpu.pipeline_mode<synchronous>, transform_indices = @transform_13, window_bounds = array<i64: 16, 1>}, {pipeline_mode = #tpu.pipeline_mode<synchronous>, transform_indices = @transform_14, window_bounds = array<i64: 16, 1>}, {transform_indices = @transform_15, window_bounds = array<i64: 1, 16, 256>}]} {
    %c0 = arith.constant 0 : index
    %c0_0 = arith.constant 0 : index
    %0 = vector.load %arg3[%c0, %c0_0] : memref<64x256xbf16, #tpu.memory_space<vmem>>, vector<64x256xbf16>
    %c0_1 = arith.constant 0 : index
    %c0_2 = arith.constant 0 : index
    %1 = vector.load %arg4[%c0_1, %c0_2] : memref<1x64xf32, #tpu.memory_space<vmem>>, vector<1x64xf32>
    %c0_3 = arith.constant 0 : index
    %c0_4 = arith.constant 0 : index
    %2 = vector.load %arg5[%c0_3, %c0_4] : memref<9x256xbf16, #tpu.memory_space<vmem>>, vector<9x256xbf16>
    %c0_5 = arith.constant 0 : index
    %c0_6 = arith.constant 0 : index
    %3 = vector.load %arg6[%c0_5, %c0_6] : memref<2x32xf32, #tpu.memory_space<vmem>>, vector<2x32xf32>
    %c0_7 = arith.constant 0 : index
    %c0_8 = arith.constant 0 : index
    %4 = vector.load %arg7[%c0_7, %c0_8] : memref<32x2xf32, #tpu.memory_space<vmem>>, vector<32x2xf32>
    %c0_9 = arith.constant 0 : index
    %c0_10 = arith.constant 0 : index
    %5 = vector.load %arg8[%c0_9, %c0_10] : memref<16x288xbf16, #tpu.memory_space<vmem>>, vector<16x288xbf16>
    %c0_11 = arith.constant 0 : index
    %c0_12 = arith.constant 0 : index
    %6 = vector.load %arg12[%c0_11, %c0_12] : memref<16x144xbf16, #tpu.memory_space<vmem>>, vector<16x144xbf16>
    %c0_13 = arith.constant 0 : index
    %c0_14 = arith.constant 0 : index
    %7 = vector.load %arg9[%c0_13, %c0_14] : memref<16x1xf32, #tpu.memory_space<vmem>>, vector<16x1xf32>
    %c0_15 = arith.constant 0 : index
    %c0_16 = arith.constant 0 : index
    %8 = vector.load %arg10[%c0_15, %c0_16] : memref<16x1xf32, #tpu.memory_space<vmem>>, vector<16x1xf32>
    %c0_17 = arith.constant 0 : index
    %c0_18 = arith.constant 0 : index
    %9 = vector.load %arg11[%c0_17, %c0_18] : memref<16x1xf32, #tpu.memory_space<vmem>>, vector<16x1xf32>
    %c0_19 = arith.constant 0 : index
    %c0_20 = arith.constant 0 : index
    %10 = vector.load %arg13[%c0_19, %c0_20] : memref<16x1xf32, #tpu.memory_space<vmem>>, vector<16x1xf32>
    %c0_21 = arith.constant 0 : index
    %c0_22 = arith.constant 0 : index
    %11 = vector.load %arg14[%c0_21, %c0_22] : memref<16x1xf32, #tpu.memory_space<vmem>>, vector<16x1xf32>
    %c0_23 = arith.constant 0 : index
    %c0_24 = arith.constant 0 : index
    %12 = vector.load %arg15[%c0_23, %c0_24] : memref<16x1xf32, #tpu.memory_space<vmem>>, vector<16x1xf32>
    %cst = arith.constant 0.000000e+00 : bf16
    %13 = vector.broadcast %cst : bf16 to vector<32x17xbf16>
    %c0_25 = arith.constant 0 : index
    %c0_26 = arith.constant 0 : index
    %14 = vector.load %arg17[%c0_25, %c0_26] : memref<32x290xbf16, #tpu.memory_space<vmem>>, vector<32x17xbf16>
    tpu.vector_store %arg17[%c0_25, %c0_26], %13 {strides = array<i32>} : memref<32x290xbf16, #tpu.memory_space<vmem>>, vector<32x17xbf16>,
    %cst_27 = arith.constant 0.000000e+00 : bf16
    %15 = vector.broadcast %cst_27 : bf16 to vector<32x17xbf16>
    %c0_28 = arith.constant 0 : index
    %c273 = arith.constant 273 : index
    %16 = vector.load %arg17[%c0_28, %c273] : memref<32x290xbf16, #tpu.memory_space<vmem>>, vector<32x17xbf16>
    tpu.vector_store %arg17[%c0_28, %c273], %15 {strides = array<i32>} : memref<32x290xbf16, #tpu.memory_space<vmem>>, vector<32x17xbf16>,
    %c0_29 = arith.constant 0 : index
    %c0_30 = arith.constant 0 : index
    %c0_31 = arith.constant 0 : index
    %17 = vector.load %arg1[%c0_29, %c0_30, %c0_31] : memref<1x16x64xf32, #tpu.memory_space<vmem>>, vector<1x16x64xf32>
    %18 = vector.shape_cast %17 : vector<1x16x64xf32> to vector<16x64xf32>
    %c0_32 = arith.constant 0 : index
    %c0_33 = arith.constant 0 : index
    %c0_34 = arith.constant 0 : index
    %19 = vector.load %arg2[%c0_32, %c0_33, %c0_34] : memref<1x16x256xf32, #tpu.memory_space<vmem>>, vector<1x16x256xf32>
    %20 = vector.shape_cast %19 : vector<1x16x256xf32> to vector<16x256xf32>
    %21 = arith.truncf %18 : vector<16x64xf32> to vector<16x64xbf16>
    %cst_35 = arith.constant dense<0.000000e+00> : vector<16x256xf32>
    %22 = tpu.matmul %21, %0, %cst_35 {dimension_numbers = #tpu.dot_dimension_numbers<[1], [0], [0], [1], [0, 0, 1, 1], [], []>} : vector<16x64xbf16>, vector<64x256xbf16>, vector<16x256xf32> -> vector<16x256xf32>
    %cst_36 = arith.constant dense<0.000000e+00> : vector<16xf32>
    %23 = vector.multi_reduction <add>, %20, %cst_36 [1] : vector<16x256xf32> to vector<16xf32>
    %24 = vector.shape_cast %23 : vector<16xf32> to vector<16x1xf32>
    %cst_37 = arith.constant 2.560000e+02 : f32
    %25 = vector.broadcast %cst_37 : f32 to vector<16x1xf32>
    %26 = arith.divf %24, %25 : vector<16x1xf32>
    %27 = vector.broadcast %1 : vector<1x64xf32> to vector<16x64xf32>
    %28 = arith.mulf %18, %27 : vector<16x64xf32>
    %cst_38 = arith.constant dense<0.000000e+00> : vector<16xf32>
    %29 = vector.multi_reduction <add>, %28, %cst_38 [1] : vector<16x64xf32> to vector<16xf32>
    %30 = vector.shape_cast %29 : vector<16xf32> to vector<16x1xf32>
    %31 = tpu.concatenate %26, %30 in 0 : vector<16x1xf32>, vector<16x1xf32> -> vector<32x1xf32>
    %cst_39 = arith.constant dense<0.000000e+00> : vector<2x1xf32>
    %32 = tpu.matmul %3, %31, %cst_39 {dimension_numbers = #tpu.dot_dimension_numbers<[1], [0], [0], [1], [0, 0, 1, 1], [], []>} : vector<2x32xf32>, vector<32x1xf32>, vector<2x1xf32> -> vector<2x1xf32>
    %cst_40 = arith.constant 0.000000e+00 : f32
    %33 = vector.broadcast %cst_40 : f32 to vector<2x1xf32>
    %34 = arith.maximumf %32, %33 : vector<2x1xf32>
    %cst_41 = arith.constant dense<0.000000e+00> : vector<32x1xf32>
    %35 = tpu.matmul %4, %34, %cst_41 {dimension_numbers = #tpu.dot_dimension_numbers<[1], [0], [0], [1], [0, 0, 1, 1], [], []>} : vector<32x2xf32>, vector<2x1xf32>, vector<32x1xf32> -> vector<32x1xf32>
    %36 = arith.negf %35 : vector<32x1xf32>
    %37 = math.exp %36 : vector<32x1xf32>
    %cst_42 = arith.constant 1.000000e+00 : f32
    %38 = vector.broadcast %cst_42 : f32 to vector<32x1xf32>
    %39 = arith.addf %38, %37 : vector<32x1xf32>
    %40 = arith.divf %38, %39 : vector<32x1xf32>
    %41 = vector.extract_strided_slice %40 {offsets = [0, 0], sizes = [16, 1], strides = [1, 1]} : vector<32x1xf32> to vector<16x1xf32>
    %42 = vector.broadcast %41 : vector<16x1xf32> to vector<16x256xf32>
    %43 = arith.mulf %20, %42 : vector<16x256xf32>
    %44 = arith.truncf %43 : vector<16x256xf32> to vector<16x256xbf16>
    %c0_43 = arith.constant 0 : index
    %c17 = arith.constant 17 : index
    %45 = vector.load %arg17[%c0_43, %c17] : memref<32x290xbf16, #tpu.memory_space<vmem>>, vector<16x256xbf16>
    tpu.vector_store %arg17[%c0_43, %c17], %44 {strides = array<i32>} : memref<32x290xbf16, #tpu.memory_space<vmem>>, vector<16x256xbf16>,
    %46 = vector.extract_strided_slice %40 {offsets = [16, 0], sizes = [16, 1], strides = [1, 1]} : vector<32x1xf32> to vector<16x1xf32>
    %47 = vector.broadcast %46 : vector<16x1xf32> to vector<16x256xf32>
    %48 = arith.mulf %22, %47 : vector<16x256xf32>
    %49 = arith.truncf %48 : vector<16x256xf32> to vector<16x256xbf16>
    %c16 = arith.constant 16 : index
    %c17_44 = arith.constant 17 : index
    %50 = vector.load %arg17[%c16, %c17_44] : memref<32x290xbf16, #tpu.memory_space<vmem>>, vector<16x256xbf16>
    tpu.vector_store %arg17[%c16, %c17_44], %49 {strides = array<i32>} : memref<32x290xbf16, #tpu.memory_space<vmem>>, vector<16x256xbf16>,
    %c0_45 = arith.constant 0 : index
    %c0_46 = arith.constant 0 : index
    %51 = vector.load %arg17[%c0_45, %c0_46] : memref<32x290xbf16, #tpu.memory_space<vmem>>, vector<32x256xbf16>
    %52 = vector.extract_strided_slice %2 {offsets = [0, 0], sizes = [1, 256], strides = [1, 1]} : vector<9x256xbf16> to vector<1x256xbf16>
    %53 = vector.broadcast %52 : vector<1x256xbf16> to vector<32x256xbf16>
    %54 = arith.mulf %51, %53 : vector<32x256xbf16>
    %c0_47 = arith.constant 0 : index
    %c1 = arith.constant 1 : index
    %55 = vector.load %arg17[%c0_47, %c1] : memref<32x290xbf16, #tpu.memory_space<vmem>>, vector<32x256xbf16>
    %c0_48 = arith.constant 0 : index
    %c2 = arith.constant 2 : index
    %56 = vector.load %arg17[%c0_48, %c2] : memref<32x290xbf16, #tpu.memory_space<vmem>>, vector<32x256xbf16>
    %57 = vector.extract_strided_slice %2 {offsets = [2, 0], sizes = [1, 256], strides = [1, 1]} : vector<9x256xbf16> to vector<1x256xbf16>
    %58 = vector.broadcast %57 : vector<1x256xbf16> to vector<32x256xbf16>
    %59 = arith.mulf %56, %58 : vector<32x256xbf16>
    %c0_49 = arith.constant 0 : index
    %c16_50 = arith.constant 16 : index
    %60 = vector.load %arg17[%c0_49, %c16_50] : memref<32x290xbf16, #tpu.memory_space<vmem>>, vector<32x256xbf16>
    %61 = vector.extract_strided_slice %2 {offsets = [3, 0], sizes = [1, 256], strides = [1, 1]} : vector<9x256xbf16> to vector<1x256xbf16>
    %62 = vector.broadcast %61 : vector<1x256xbf16> to vector<32x256xbf16>
    %63 = arith.mulf %60, %62 : vector<32x256xbf16>
    %c0_51 = arith.constant 0 : index
    %c17_52 = arith.constant 17 : index
    %64 = vector.load %arg17[%c0_51, %c17_52] : memref<32x290xbf16, #tpu.memory_space<vmem>>, vector<32x256xbf16>
    %c0_53 = arith.constant 0 : index
    %c18 = arith.constant 18 : index
    %65 = vector.load %arg17[%c0_53, %c18] : memref<32x290xbf16, #tpu.memory_space<vmem>>, vector<32x256xbf16>
    %66 = vector.extract_strided_slice %2 {offsets = [5, 0], sizes = [1, 256], strides = [1, 1]} : vector<9x256xbf16> to vector<1x256xbf16>
    %67 = vector.broadcast %66 : vector<1x256xbf16> to vector<32x256xbf16>
    %68 = arith.mulf %65, %67 : vector<32x256xbf16>
    %c0_54 = arith.constant 0 : index
    %c32 = arith.constant 32 : index
    %69 = vector.load %arg17[%c0_54, %c32] : memref<32x290xbf16, #tpu.memory_space<vmem>>, vector<32x256xbf16>
    %70 = vector.extract_strided_slice %2 {offsets = [6, 0], sizes = [1, 256], strides = [1, 1]} : vector<9x256xbf16> to vector<1x256xbf16>
    %71 = vector.broadcast %70 : vector<1x256xbf16> to vector<32x256xbf16>
    %72 = arith.mulf %69, %71 : vector<32x256xbf16>
    %c0_55 = arith.constant 0 : index
    %c33 = arith.constant 33 : index
    %73 = vector.load %arg17[%c0_55, %c33] : memref<32x290xbf16, #tpu.memory_space<vmem>>, vector<32x256xbf16>
    %c0_56 = arith.constant 0 : index
    %c34 = arith.constant 34 : index
    %74 = vector.load %arg17[%c0_56, %c34] : memref<32x290xbf16, #tpu.memory_space<vmem>>, vector<32x256xbf16>
    %75 = vector.extract_strided_slice %2 {offsets = [8, 0], sizes = [1, 256], strides = [1, 1]} : vector<9x256xbf16> to vector<1x256xbf16>
    %76 = vector.broadcast %75 : vector<1x256xbf16> to vector<32x256xbf16>
    %77 = arith.mulf %74, %76 : vector<32x256xbf16>
    %78 = tpu.concatenate %54, %55, %59, %63, %64, %68, %72, %73, %77 in 0 : vector<32x256xbf16>, vector<32x256xbf16>, vector<32x256xbf16>, vector<32x256xbf16>, vector<32x256xbf16>, vector<32x256xbf16>, vector<32x256xbf16>, vector<32x256xbf16>, vector<32x256xbf16> -> vector<288x256xbf16>
    %cst_57 = arith.constant dense<0.000000e+00> : vector<16x256xf32>
    %79 = tpu.matmul %5, %78, %cst_57 {dimension_numbers = #tpu.dot_dimension_numbers<[1], [0], [0], [1], [0, 0, 1, 1], [], []>} : vector<16x288xbf16>, vector<288x256xbf16>, vector<16x256xf32> -> vector<16x256xf32>
    %80 = vector.broadcast %7 : vector<16x1xf32> to vector<16x256xf32>
    %81 = arith.addf %79, %80 : vector<16x256xf32>
    %cst_58 = arith.constant dense<0.000000e+00> : vector<16xf32>
    %82 = vector.multi_reduction <add>, %81, %cst_58 [1] : vector<16x256xf32> to vector<16xf32>
    %83 = vector.shape_cast %82 : vector<16xf32> to vector<16x1xf32>
    %cst_59 = arith.constant 2.560000e+02 : f32
    %84 = vector.broadcast %cst_59 : f32 to vector<16x1xf32>
    %85 = arith.divf %83, %84 : vector<16x1xf32>
    %86 = vector.extract_strided_slice %85 {offsets = [0, 0], sizes = [4, 1], strides = [1, 1]} : vector<16x1xf32> to vector<4x1xf32>
    %cst_60 = arith.constant dense<0.000000e+00> : vector<1xf32>
    %87 = vector.multi_reduction <add>, %86, %cst_60 [0] : vector<4x1xf32> to vector<1xf32>
    %88 = vector.shape_cast %87 : vector<1xf32> to vector<1x1xf32>
    %cst_61 = arith.constant 4.000000e+00 : f32
    %89 = vector.broadcast %cst_61 : f32 to vector<1x1xf32>
    %90 = arith.divf %88, %89 : vector<1x1xf32>
    %91 = vector.shape_cast %90 : vector<1x1xf32> to vector<1x1xf32>
    %92 = vector.broadcast %91 : vector<1x1xf32> to vector<4x1xf32>
    %93 = vector.extract_strided_slice %85 {offsets = [4, 0], sizes = [4, 1], strides = [1, 1]} : vector<16x1xf32> to vector<4x1xf32>
    %cst_62 = arith.constant dense<0.000000e+00> : vector<1xf32>
    %94 = vector.multi_reduction <add>, %93, %cst_62 [0] : vector<4x1xf32> to vector<1xf32>
    %95 = vector.shape_cast %94 : vector<1xf32> to vector<1x1xf32>
    %cst_63 = arith.constant 4.000000e+00 : f32
    %96 = vector.broadcast %cst_63 : f32 to vector<1x1xf32>
    %97 = arith.divf %95, %96 : vector<1x1xf32>
    %98 = vector.shape_cast %97 : vector<1x1xf32> to vector<1x1xf32>
    %99 = vector.broadcast %98 : vector<1x1xf32> to vector<4x1xf32>
    %100 = vector.extract_strided_slice %85 {offsets = [8, 0], sizes = [4, 1], strides = [1, 1]} : vector<16x1xf32> to vector<4x1xf32>
    %cst_64 = arith.constant dense<0.000000e+00> : vector<1xf32>
    %101 = vector.multi_reduction <add>, %100, %cst_64 [0] : vector<4x1xf32> to vector<1xf32>
    %102 = vector.shape_cast %101 : vector<1xf32> to vector<1x1xf32>
    %cst_65 = arith.constant 4.000000e+00 : f32
    %103 = vector.broadcast %cst_65 : f32 to vector<1x1xf32>
    %104 = arith.divf %102, %103 : vector<1x1xf32>
    %105 = vector.shape_cast %104 : vector<1x1xf32> to vector<1x1xf32>
    %106 = vector.broadcast %105 : vector<1x1xf32> to vector<4x1xf32>
    %107 = vector.extract_strided_slice %85 {offsets = [12, 0], sizes = [4, 1], strides = [1, 1]} : vector<16x1xf32> to vector<4x1xf32>
    %cst_66 = arith.constant dense<0.000000e+00> : vector<1xf32>
    %108 = vector.multi_reduction <add>, %107, %cst_66 [0] : vector<4x1xf32> to vector<1xf32>
    %109 = vector.shape_cast %108 : vector<1xf32> to vector<1x1xf32>
    %cst_67 = arith.constant 4.000000e+00 : f32
    %110 = vector.broadcast %cst_67 : f32 to vector<1x1xf32>
    %111 = arith.divf %109, %110 : vector<1x1xf32>
    %112 = vector.shape_cast %111 : vector<1x1xf32> to vector<1x1xf32>
    %113 = vector.broadcast %112 : vector<1x1xf32> to vector<4x1xf32>
    %114 = tpu.concatenate %92, %99, %106, %113 in 0 : vector<4x1xf32>, vector<4x1xf32>, vector<4x1xf32>, vector<4x1xf32> -> vector<16x1xf32>
    %115 = vector.broadcast %114 : vector<16x1xf32> to vector<16x256xf32>
    %116 = arith.subf %81, %115 : vector<16x256xf32>
    %117 = arith.mulf %116, %116 : vector<16x256xf32>
    %cst_68 = arith.constant dense<0.000000e+00> : vector<16xf32>
    %118 = vector.multi_reduction <add>, %117, %cst_68 [1] : vector<16x256xf32> to vector<16xf32>
    %119 = vector.shape_cast %118 : vector<16xf32> to vector<16x1xf32>
    %cst_69 = arith.constant 2.560000e+02 : f32
    %120 = vector.broadcast %cst_69 : f32 to vector<16x1xf32>
    %121 = arith.divf %119, %120 : vector<16x1xf32>
    %122 = vector.extract_strided_slice %121 {offsets = [0, 0], sizes = [4, 1], strides = [1, 1]} : vector<16x1xf32> to vector<4x1xf32>
    %cst_70 = arith.constant dense<0.000000e+00> : vector<1xf32>
    %123 = vector.multi_reduction <add>, %122, %cst_70 [0] : vector<4x1xf32> to vector<1xf32>
    %124 = vector.shape_cast %123 : vector<1xf32> to vector<1x1xf32>
    %cst_71 = arith.constant 4.000000e+00 : f32
    %125 = vector.broadcast %cst_71 : f32 to vector<1x1xf32>
    %126 = arith.divf %124, %125 : vector<1x1xf32>
    %127 = vector.shape_cast %126 : vector<1x1xf32> to vector<1x1xf32>
    %128 = vector.broadcast %127 : vector<1x1xf32> to vector<4x1xf32>
    %129 = vector.extract_strided_slice %121 {offsets = [4, 0], sizes = [4, 1], strides = [1, 1]} : vector<16x1xf32> to vector<4x1xf32>
    %cst_72 = arith.constant dense<0.000000e+00> : vector<1xf32>
    %130 = vector.multi_reduction <add>, %129, %cst_72 [0] : vector<4x1xf32> to vector<1xf32>
    %131 = vector.shape_cast %130 : vector<1xf32> to vector<1x1xf32>
    %cst_73 = arith.constant 4.000000e+00 : f32
    %132 = vector.broadcast %cst_73 : f32 to vector<1x1xf32>
    %133 = arith.divf %131, %132 : vector<1x1xf32>
    %134 = vector.shape_cast %133 : vector<1x1xf32> to vector<1x1xf32>
    %135 = vector.broadcast %134 : vector<1x1xf32> to vector<4x1xf32>
    %136 = vector.extract_strided_slice %121 {offsets = [8, 0], sizes = [4, 1], strides = [1, 1]} : vector<16x1xf32> to vector<4x1xf32>
    %cst_74 = arith.constant dense<0.000000e+00> : vector<1xf32>
    %137 = vector.multi_reduction <add>, %136, %cst_74 [0] : vector<4x1xf32> to vector<1xf32>
    %138 = vector.shape_cast %137 : vector<1xf32> to vector<1x1xf32>
    %cst_75 = arith.constant 4.000000e+00 : f32
    %139 = vector.broadcast %cst_75 : f32 to vector<1x1xf32>
    %140 = arith.divf %138, %139 : vector<1x1xf32>
    %141 = vector.shape_cast %140 : vector<1x1xf32> to vector<1x1xf32>
    %142 = vector.broadcast %141 : vector<1x1xf32> to vector<4x1xf32>
    %143 = vector.extract_strided_slice %121 {offsets = [12, 0], sizes = [4, 1], strides = [1, 1]} : vector<16x1xf32> to vector<4x1xf32>
    %cst_76 = arith.constant dense<0.000000e+00> : vector<1xf32>
    %144 = vector.multi_reduction <add>, %143, %cst_76 [0] : vector<4x1xf32> to vector<1xf32>
    %145 = vector.shape_cast %144 : vector<1xf32> to vector<1x1xf32>
    %cst_77 = arith.constant 4.000000e+00 : f32
    %146 = vector.broadcast %cst_77 : f32 to vector<1x1xf32>
    %147 = arith.divf %145, %146 : vector<1x1xf32>
    %148 = vector.shape_cast %147 : vector<1x1xf32> to vector<1x1xf32>
    %149 = vector.broadcast %148 : vector<1x1xf32> to vector<4x1xf32>
    %150 = tpu.concatenate %128, %135, %142, %149 in 0 : vector<4x1xf32>, vector<4x1xf32>, vector<4x1xf32>, vector<4x1xf32> -> vector<16x1xf32>
    %cst_78 = arith.constant 9.99999974E-6 : f32
    %151 = vector.broadcast %cst_78 : f32 to vector<16x1xf32>
    %152 = arith.addf %150, %151 : vector<16x1xf32>
    %153 = math.rsqrt %152 : vector<16x1xf32>
    %154 = vector.broadcast %153 : vector<16x1xf32> to vector<16x256xf32>
    %155 = arith.mulf %116, %154 : vector<16x256xf32>
    %156 = vector.broadcast %8 : vector<16x1xf32> to vector<16x256xf32>
    %157 = arith.mulf %155, %156 : vector<16x256xf32>
    %158 = vector.broadcast %9 : vector<16x1xf32> to vector<16x256xf32>
    %159 = arith.addf %157, %158 : vector<16x256xf32>
    %cst_79 = arith.constant 2.000000e-01 : f32
    %160 = vector.broadcast %cst_79 : f32 to vector<16x256xf32>
    %161 = arith.mulf %160, %159 : vector<16x256xf32>
    %162 = arith.maximumf %159, %161 : vector<16x256xf32>
    %163 = arith.truncf %162 : vector<16x256xf32> to vector<16x256xbf16>
    %c0_80 = arith.constant 0 : index
    %c17_81 = arith.constant 17 : index
    %164 = vector.load %arg17[%c0_80, %c17_81] : memref<32x290xbf16, #tpu.memory_space<vmem>>, vector<16x256xbf16>
    tpu.vector_store %arg17[%c0_80, %c17_81], %163 {strides = array<i32>} : memref<32x290xbf16, #tpu.memory_space<vmem>>, vector<16x256xbf16>,
    %c0_82 = arith.constant 0 : index
    %c0_83 = arith.constant 0 : index
    %165 = vector.load %arg17[%c0_82, %c0_83] : memref<32x290xbf16, #tpu.memory_space<vmem>>, vector<16x256xbf16>
    %166 = vector.extract_strided_slice %2 {offsets = [0, 0], sizes = [1, 256], strides = [1, 1]} : vector<9x256xbf16> to vector<1x256xbf16>
    %167 = vector.broadcast %166 : vector<1x256xbf16> to vector<16x256xbf16>
    %168 = arith.mulf %165, %167 : vector<16x256xbf16>
    %c0_84 = arith.constant 0 : index
    %c1_85 = arith.constant 1 : index
    %169 = vector.load %arg17[%c0_84, %c1_85] : memref<32x290xbf16, #tpu.memory_space<vmem>>, vector<16x256xbf16>
    %c0_86 = arith.constant 0 : index
    %c2_87 = arith.constant 2 : index
    %170 = vector.load %arg17[%c0_86, %c2_87] : memref<32x290xbf16, #tpu.memory_space<vmem>>, vector<16x256xbf16>
    %171 = vector.extract_strided_slice %2 {offsets = [2, 0], sizes = [1, 256], strides = [1, 1]} : vector<9x256xbf16> to vector<1x256xbf16>
    %172 = vector.broadcast %171 : vector<1x256xbf16> to vector<16x256xbf16>
    %173 = arith.mulf %170, %172 : vector<16x256xbf16>
    %c0_88 = arith.constant 0 : index
    %c16_89 = arith.constant 16 : index
    %174 = vector.load %arg17[%c0_88, %c16_89] : memref<32x290xbf16, #tpu.memory_space<vmem>>, vector<16x256xbf16>
    %175 = vector.extract_strided_slice %2 {offsets = [3, 0], sizes = [1, 256], strides = [1, 1]} : vector<9x256xbf16> to vector<1x256xbf16>
    %176 = vector.broadcast %175 : vector<1x256xbf16> to vector<16x256xbf16>
    %177 = arith.mulf %174, %176 : vector<16x256xbf16>
    %c0_90 = arith.constant 0 : index
    %c17_91 = arith.constant 17 : index
    %178 = vector.load %arg17[%c0_90, %c17_91] : memref<32x290xbf16, #tpu.memory_space<vmem>>, vector<16x256xbf16>
    %c0_92 = arith.constant 0 : index
    %c18_93 = arith.constant 18 : index
    %179 = vector.load %arg17[%c0_92, %c18_93] : memref<32x290xbf16, #tpu.memory_space<vmem>>, vector<16x256xbf16>
    %180 = vector.extract_strided_slice %2 {offsets = [5, 0], sizes = [1, 256], strides = [1, 1]} : vector<9x256xbf16> to vector<1x256xbf16>
    %181 = vector.broadcast %180 : vector<1x256xbf16> to vector<16x256xbf16>
    %182 = arith.mulf %179, %181 : vector<16x256xbf16>
    %c0_94 = arith.constant 0 : index
    %c32_95 = arith.constant 32 : index
    %183 = vector.load %arg17[%c0_94, %c32_95] : memref<32x290xbf16, #tpu.memory_space<vmem>>, vector<16x256xbf16>
    %184 = vector.extract_strided_slice %2 {offsets = [6, 0], sizes = [1, 256], strides = [1, 1]} : vector<9x256xbf16> to vector<1x256xbf16>
    %185 = vector.broadcast %184 : vector<1x256xbf16> to vector<16x256xbf16>
    %186 = arith.mulf %183, %185 : vector<16x256xbf16>
    %c0_96 = arith.constant 0 : index
    %c33_97 = arith.constant 33 : index
    %187 = vector.load %arg17[%c0_96, %c33_97] : memref<32x290xbf16, #tpu.memory_space<vmem>>, vector<16x256xbf16>
    %c0_98 = arith.constant 0 : index
    %c34_99 = arith.constant 34 : index
    %188 = vector.load %arg17[%c0_98, %c34_99] : memref<32x290xbf16, #tpu.memory_space<vmem>>, vector<16x256xbf16>
    %189 = vector.extract_strided_slice %2 {offsets = [8, 0], sizes = [1, 256], strides = [1, 1]} : vector<9x256xbf16> to vector<1x256xbf16>
    %190 = vector.broadcast %189 : vector<1x256xbf16> to vector<16x256xbf16>
    %191 = arith.mulf %188, %190 : vector<16x256xbf16>
    %192 = tpu.concatenate %168, %169, %173, %177, %178, %182, %186, %187, %191 in 0 : vector<16x256xbf16>, vector<16x256xbf16>, vector<16x256xbf16>, vector<16x256xbf16>, vector<16x256xbf16>, vector<16x256xbf16>, vector<16x256xbf16>, vector<16x256xbf16>, vector<16x256xbf16> -> vector<144x256xbf16>
    %cst_100 = arith.constant dense<0.000000e+00> : vector<16x256xf32>
    %193 = tpu.matmul %6, %192, %cst_100 {dimension_numbers = #tpu.dot_dimension_numbers<[1], [0], [0], [1], [0, 0, 1, 1], [], []>} : vector<16x144xbf16>, vector<144x256xbf16>, vector<16x256xf32> -> vector<16x256xf32>
    %194 = vector.broadcast %10 : vector<16x1xf32> to vector<16x256xf32>
    %195 = arith.addf %193, %194 : vector<16x256xf32>
    %cst_101 = arith.constant dense<0.000000e+00> : vector<16xf32>
    %196 = vector.multi_reduction <add>, %195, %cst_101 [1] : vector<16x256xf32> to vector<16xf32>
    %197 = vector.shape_cast %196 : vector<16xf32> to vector<16x1xf32>
    %cst_102 = arith.constant 2.560000e+02 : f32
    %198 = vector.broadcast %cst_102 : f32 to vector<16x1xf32>
    %199 = arith.divf %197, %198 : vector<16x1xf32>
    %200 = vector.extract_strided_slice %199 {offsets = [0, 0], sizes = [4, 1], strides = [1, 1]} : vector<16x1xf32> to vector<4x1xf32>
    %cst_103 = arith.constant dense<0.000000e+00> : vector<1xf32>
    %201 = vector.multi_reduction <add>, %200, %cst_103 [0] : vector<4x1xf32> to vector<1xf32>
    %202 = vector.shape_cast %201 : vector<1xf32> to vector<1x1xf32>
    %cst_104 = arith.constant 4.000000e+00 : f32
    %203 = vector.broadcast %cst_104 : f32 to vector<1x1xf32>
    %204 = arith.divf %202, %203 : vector<1x1xf32>
    %205 = vector.shape_cast %204 : vector<1x1xf32> to vector<1x1xf32>
    %206 = vector.broadcast %205 : vector<1x1xf32> to vector<4x1xf32>
    %207 = vector.extract_strided_slice %199 {offsets = [4, 0], sizes = [4, 1], strides = [1, 1]} : vector<16x1xf32> to vector<4x1xf32>
    %cst_105 = arith.constant dense<0.000000e+00> : vector<1xf32>
    %208 = vector.multi_reduction <add>, %207, %cst_105 [0] : vector<4x1xf32> to vector<1xf32>
    %209 = vector.shape_cast %208 : vector<1xf32> to vector<1x1xf32>
    %cst_106 = arith.constant 4.000000e+00 : f32
    %210 = vector.broadcast %cst_106 : f32 to vector<1x1xf32>
    %211 = arith.divf %209, %210 : vector<1x1xf32>
    %212 = vector.shape_cast %211 : vector<1x1xf32> to vector<1x1xf32>
    %213 = vector.broadcast %212 : vector<1x1xf32> to vector<4x1xf32>
    %214 = vector.extract_strided_slice %199 {offsets = [8, 0], sizes = [4, 1], strides = [1, 1]} : vector<16x1xf32> to vector<4x1xf32>
    %cst_107 = arith.constant dense<0.000000e+00> : vector<1xf32>
    %215 = vector.multi_reduction <add>, %214, %cst_107 [0] : vector<4x1xf32> to vector<1xf32>
    %216 = vector.shape_cast %215 : vector<1xf32> to vector<1x1xf32>
    %cst_108 = arith.constant 4.000000e+00 : f32
    %217 = vector.broadcast %cst_108 : f32 to vector<1x1xf32>
    %218 = arith.divf %216, %217 : vector<1x1xf32>
    %219 = vector.shape_cast %218 : vector<1x1xf32> to vector<1x1xf32>
    %220 = vector.broadcast %219 : vector<1x1xf32> to vector<4x1xf32>
    %221 = vector.extract_strided_slice %199 {offsets = [12, 0], sizes = [4, 1], strides = [1, 1]} : vector<16x1xf32> to vector<4x1xf32>
    %cst_109 = arith.constant dense<0.000000e+00> : vector<1xf32>
    %222 = vector.multi_reduction <add>, %221, %cst_109 [0] : vector<4x1xf32> to vector<1xf32>
    %223 = vector.shape_cast %222 : vector<1xf32> to vector<1x1xf32>
    %cst_110 = arith.constant 4.000000e+00 : f32
    %224 = vector.broadcast %cst_110 : f32 to vector<1x1xf32>
    %225 = arith.divf %223, %224 : vector<1x1xf32>
    %226 = vector.shape_cast %225 : vector<1x1xf32> to vector<1x1xf32>
    %227 = vector.broadcast %226 : vector<1x1xf32> to vector<4x1xf32>
    %228 = tpu.concatenate %206, %213, %220, %227 in 0 : vector<4x1xf32>, vector<4x1xf32>, vector<4x1xf32>, vector<4x1xf32> -> vector<16x1xf32>
    %229 = vector.broadcast %228 : vector<16x1xf32> to vector<16x256xf32>
    %230 = arith.subf %195, %229 : vector<16x256xf32>
    %231 = arith.mulf %230, %230 : vector<16x256xf32>
    %cst_111 = arith.constant dense<0.000000e+00> : vector<16xf32>
    %232 = vector.multi_reduction <add>, %231, %cst_111 [1] : vector<16x256xf32> to vector<16xf32>
    %233 = vector.shape_cast %232 : vector<16xf32> to vector<16x1xf32>
    %cst_112 = arith.constant 2.560000e+02 : f32
    %234 = vector.broadcast %cst_112 : f32 to vector<16x1xf32>
    %235 = arith.divf %233, %234 : vector<16x1xf32>
    %236 = vector.extract_strided_slice %235 {offsets = [0, 0], sizes = [4, 1], strides = [1, 1]} : vector<16x1xf32> to vector<4x1xf32>
    %cst_113 = arith.constant dense<0.000000e+00> : vector<1xf32>
    %237 = vector.multi_reduction <add>, %236, %cst_113 [0] : vector<4x1xf32> to vector<1xf32>
    %238 = vector.shape_cast %237 : vector<1xf32> to vector<1x1xf32>
    %cst_114 = arith.constant 4.000000e+00 : f32
    %239 = vector.broadcast %cst_114 : f32 to vector<1x1xf32>
    %240 = arith.divf %238, %239 : vector<1x1xf32>
    %241 = vector.shape_cast %240 : vector<1x1xf32> to vector<1x1xf32>
    %242 = vector.broadcast %241 : vector<1x1xf32> to vector<4x1xf32>
    %243 = vector.extract_strided_slice %235 {offsets = [4, 0], sizes = [4, 1], strides = [1, 1]} : vector<16x1xf32> to vector<4x1xf32>
    %cst_115 = arith.constant dense<0.000000e+00> : vector<1xf32>
    %244 = vector.multi_reduction <add>, %243, %cst_115 [0] : vector<4x1xf32> to vector<1xf32>
    %245 = vector.shape_cast %244 : vector<1xf32> to vector<1x1xf32>
    %cst_116 = arith.constant 4.000000e+00 : f32
    %246 = vector.broadcast %cst_116 : f32 to vector<1x1xf32>
    %247 = arith.divf %245, %246 : vector<1x1xf32>
    %248 = vector.shape_cast %247 : vector<1x1xf32> to vector<1x1xf32>
    %249 = vector.broadcast %248 : vector<1x1xf32> to vector<4x1xf32>
    %250 = vector.extract_strided_slice %235 {offsets = [8, 0], sizes = [4, 1], strides = [1, 1]} : vector<16x1xf32> to vector<4x1xf32>
    %cst_117 = arith.constant dense<0.000000e+00> : vector<1xf32>
    %251 = vector.multi_reduction <add>, %250, %cst_117 [0] : vector<4x1xf32> to vector<1xf32>
    %252 = vector.shape_cast %251 : vector<1xf32> to vector<1x1xf32>
    %cst_118 = arith.constant 4.000000e+00 : f32
    %253 = vector.broadcast %cst_118 : f32 to vector<1x1xf32>
    %254 = arith.divf %252, %253 : vector<1x1xf32>
    %255 = vector.shape_cast %254 : vector<1x1xf32> to vector<1x1xf32>
    %256 = vector.broadcast %255 : vector<1x1xf32> to vector<4x1xf32>
    %257 = vector.extract_strided_slice %235 {offsets = [12, 0], sizes = [4, 1], strides = [1, 1]} : vector<16x1xf32> to vector<4x1xf32>
    %cst_119 = arith.constant dense<0.000000e+00> : vector<1xf32>
    %258 = vector.multi_reduction <add>, %257, %cst_119 [0] : vector<4x1xf32> to vector<1xf32>
    %259 = vector.shape_cast %258 : vector<1xf32> to vector<1x1xf32>
    %cst_120 = arith.constant 4.000000e+00 : f32
    %260 = vector.broadcast %cst_120 : f32 to vector<1x1xf32>
    %261 = arith.divf %259, %260 : vector<1x1xf32>
    %262 = vector.shape_cast %261 : vector<1x1xf32> to vector<1x1xf32>
    %263 = vector.broadcast %262 : vector<1x1xf32> to vector<4x1xf32>
    %264 = tpu.concatenate %242, %249, %256, %263 in 0 : vector<4x1xf32>, vector<4x1xf32>, vector<4x1xf32>, vector<4x1xf32> -> vector<16x1xf32>
    %cst_121 = arith.constant 9.99999974E-6 : f32
    %265 = vector.broadcast %cst_121 : f32 to vector<16x1xf32>
    %266 = arith.addf %264, %265 : vector<16x1xf32>
    %267 = math.rsqrt %266 : vector<16x1xf32>
    %268 = vector.broadcast %267 : vector<16x1xf32> to vector<16x256xf32>
    %269 = arith.mulf %230, %268 : vector<16x256xf32>
    %270 = vector.broadcast %11 : vector<16x1xf32> to vector<16x256xf32>
    %271 = arith.mulf %269, %270 : vector<16x256xf32>
    %272 = vector.broadcast %12 : vector<16x1xf32> to vector<16x256xf32>
    %273 = arith.addf %271, %272 : vector<16x256xf32>
    %cst_122 = arith.constant 2.000000e-01 : f32
    %274 = vector.broadcast %cst_122 : f32 to vector<16x256xf32>
    %275 = arith.mulf %274, %273 : vector<16x256xf32>
    %276 = arith.maximumf %273, %275 : vector<16x256xf32>
    %c0_123 = arith.constant 0 : index
    %c0_124 = arith.constant 0 : index
    %c0_125 = arith.constant 0 : index
    %277 = vector.load %arg16[%c0_123, %c0_124, %c0_125] : memref<1x16x256xf32, #tpu.memory_space<vmem>>, vector<1x16x256xf32>
    %278 = vector.shape_cast %277 : vector<1x16x256xf32> to vector<16x256xf32>
    %279 = vector.shape_cast %276 : vector<16x256xf32> to vector<1x16x256xf32>
    tpu.vector_store %arg16[%c0_123, %c0_124, %c0_125], %279 {strides = array<i32>} : memref<1x16x256xf32, #tpu.memory_space<vmem>>, vector<1x16x256xf32>,
    return
  }
  func.func @transform_0(%arg0: i32) -> (i32, i32, i32) {
    %c0_i32 = arith.constant 0 : i32
    %c0_i32_0 = arith.constant 0 : i32
    %c0_i32_1 = arith.constant 0 : i32
    return %arg0, %c0_i32, %c0_i32_0 : i32, i32, i32
  }
  func.func @transform_1(%arg0: i32) -> (i32, i32, i32) {
    %c0_i32 = arith.constant 0 : i32
    %c0_i32_0 = arith.constant 0 : i32
    %c0_i32_1 = arith.constant 0 : i32
    return %arg0, %c0_i32, %c0_i32_0 : i32, i32, i32
  }
  func.func @transform_2(%arg0: i32) -> (i32, i32) {
    %c0_i32 = arith.constant 0 : i32
    %c0_i32_0 = arith.constant 0 : i32
    %c0_i32_1 = arith.constant 0 : i32
    return %c0_i32, %c0_i32_0 : i32, i32
  }
  func.func @transform_3(%arg0: i32) -> (i32, i32) {
    %c0_i32 = arith.constant 0 : i32
    %c0_i32_0 = arith.constant 0 : i32
    %c0_i32_1 = arith.constant 0 : i32
    return %c0_i32, %c0_i32_0 : i32, i32
  }
  func.func @transform_4(%arg0: i32) -> (i32, i32) {
    %c0_i32 = arith.constant 0 : i32
    %c0_i32_0 = arith.constant 0 : i32
    %c0_i32_1 = arith.constant 0 : i32
    return %c0_i32, %c0_i32_0 : i32, i32
  }
  func.func @transform_5(%arg0: i32) -> (i32, i32) {
    %c0_i32 = arith.constant 0 : i32
    %c0_i32_0 = arith.constant 0 : i32
    %c0_i32_1 = arith.constant 0 : i32
    return %c0_i32, %c0_i32_0 : i32, i32
  }
  func.func @transform_6(%arg0: i32) -> (i32, i32) {
    %c0_i32 = arith.constant 0 : i32
    %c0_i32_0 = arith.constant 0 : i32
    %c0_i32_1 = arith.constant 0 : i32
    return %c0_i32, %c0_i32_0 : i32, i32
  }
  func.func @transform_7(%arg0: i32) -> (i32, i32) {
    %c0_i32 = arith.constant 0 : i32
    %c0_i32_0 = arith.constant 0 : i32
    %c0_i32_1 = arith.constant 0 : i32
    return %c0_i32, %c0_i32_0 : i32, i32
  }
  func.func @transform_8(%arg0: i32) -> (i32, i32) {
    %c0_i32 = arith.constant 0 : i32
    %c0_i32_0 = arith.constant 0 : i32
    %c0_i32_1 = arith.constant 0 : i32
    return %c0_i32, %c0_i32_0 : i32, i32
  }
  func.func @transform_9(%arg0: i32) -> (i32, i32) {
    %c0_i32 = arith.constant 0 : i32
    %c0_i32_0 = arith.constant 0 : i32
    %c0_i32_1 = arith.constant 0 : i32
    return %c0_i32, %c0_i32_0 : i32, i32
  }
  func.func @transform_10(%arg0: i32) -> (i32, i32) {
    %c0_i32 = arith.constant 0 : i32
    %c0_i32_0 = arith.constant 0 : i32
    %c0_i32_1 = arith.constant 0 : i32
    return %c0_i32, %c0_i32_0 : i32, i32
  }
  func.func @transform_11(%arg0: i32) -> (i32, i32) {
    %c0_i32 = arith.constant 0 : i32
    %c0_i32_0 = arith.constant 0 : i32
    %c0_i32_1 = arith.constant 0 : i32
    return %c0_i32, %c0_i32_0 : i32, i32
  }
  func.func @transform_12(%arg0: i32) -> (i32, i32) {
    %c0_i32 = arith.constant 0 : i32
    %c0_i32_0 = arith.constant 0 : i32
    %c0_i32_1 = arith.constant 0 : i32
    return %c0_i32, %c0_i32_0 : i32, i32
  }
  func.func @transform_13(%arg0: i32) -> (i32, i32) {
    %c0_i32 = arith.constant 0 : i32
    %c0_i32_0 = arith.constant 0 : i32
    %c0_i32_1 = arith.constant 0 : i32
    return %c0_i32, %c0_i32_0 : i32, i32
  }
  func.func @transform_14(%arg0: i32) -> (i32, i32) {
    %c0_i32 = arith.constant 0 : i32
    %c0_i32_0 = arith.constant 0 : i32
    %c0_i32_1 = arith.constant 0 : i32
    return %c0_i32, %c0_i32_0 : i32, i32
  }
  func.func @transform_15(%arg0: i32) -> (i32, i32, i32) {
    %c0_i32 = arith.constant 0 : i32
    %c0_i32_0 = arith.constant 0 : i32
    %c0_i32_1 = arith.constant 0 : i32
    return %arg0, %c0_i32, %c0_i32_0 : i32, i32, i32
  }
}

</mosaic_0001>

<bundles_post_ra>
// kernel: tpu_custom_call.1
= control target key start
LH: loop header
LB: loop body
LE: loop exit
PB: predicated region body
PF: predicated region fallthrough
CT: control target
= control target key end

     0   :  { %s3384_s0 = inlined_call_operand.hbm [shape: f32[2,16,64], index: 0, kind: input, shape index: {}]   ;;  %s3385_s1 = inlined_call_operand.vmem [shape: f32[2,16,256], index: 1, kind: input, shape index: {}]   ;;  %s3386_s2 = inlined_call_operand.vmem [shape: bf16[64,256], index: 2, kind: input, shape index: {}]   ;;  %s3387_s3 = inlined_call_operand.hbm [shape: f32[1,64], index: 3, kind: input, shape index: {}]   ;;  %s3388_s4 = inlined_call_operand.hbm [shape: bf16[9,256], index: 4, kind: input, shape index: {}]   ;;  %s3389_s5 = inlined_call_operand.vmem [shape: f32[2,32], index: 5, kind: input, shape index: {}]   ;;  %s3390_s6 = inlined_call_operand.vmem [shape: f32[32,2], index: 6, kind: input, shape index: {}]   ;;  %s3391_s7 = inlined_call_operand.vmem [shape: bf16[16,288], index: 7, kind: input, shape index: {}]   ;;  %s3392_s8 = inlined_call_operand.vmem [shape: f32[16,1], index: 8, kind: input, shape index: {}]   ;;  %s3393_s9 = inlined_call_operand.vmem [shape: f32[16,1], index: 9, kind: input, shape index: {}]   ;;  %s3394_s10 = inlined_call_operand.vmem [shape: f32[16,1], index: 10, kind: input, shape index: {}]   ;;  %s3395_s11 = inlined_call_operand.vmem [shape: bf16[16,144], index: 11, kind: input, shape index: {}]   ;;  %s3396_s12 = inlined_call_operand.vmem [shape: f32[16,1], index: 12, kind: input, shape index: {}]   ;;  %s3397_s13 = inlined_call_operand.vmem [shape: f32[16,1], index: 13, kind: input, shape index: {}]   ;;  %s3398_s14 = inlined_call_operand.vmem [shape: f32[16,1], index: 14, kind: input, shape index: {}]   ;;  %s3399_s15 = inlined_call_operand.hbm [shape: f32[2,16,256], index: 15, kind: output, shape index: {}]  }
   0x1   :  { %3417 = sst [smem:[#allocation19_spill]] %s3387_s3 }
   0x2   :  { %3418 = sst [smem:[#allocation20_spill]] %s3395_s11 }
   0x3   :  { %3419 = sst [smem:[#allocation21_spill]] %s3396_s12 }
   0x4   :  { %3420 = sst [smem:[#allocation22_spill]] %s3397_s13 }
   0x5   :  { %3421 = sst [smem:[#allocation23_spill]] %s3398_s14 }
   0x6   :  { %3422 = sst [smem:[#allocation24_spill]] %s3399_s15 }
   0x7   :  { %20 = vsyncpa [#allocation4], 0 }
   0x8   :  { %22 = vsyncpa [#allocation4 + $0x1], 0 }
   0x9   :  { %23 = vsyncpa [#allocation7], 0 }
   0xa   :  { %24 = vsyncpa [#allocation5], 0 }
   0xb   :  { %26 = vsyncpa [#allocation5 + $0x1], 0  ;;  %s2624_s18 = smov 0   ;;  %s2626_s19 = smov 0  }
   0xc   :  { %s2628_s20 = smov 0   ;;  %s2630_s21 = smov 0  }
   0xd LB: > { %3423 = sst [smem:[#allocation13_spill]] %s2505_s18  ;;  %s2645_s22 = sadd.s32 4294967295, %s2517_s21   ;;  %s2517_s21 = sphi %s2630_s21, %s3454_s21   ;;  %s2513_s20 = sphi %s2628_s20, %s3456_s20   ;;  %s2509_s19 = sphi %s2626_s19, %s3458_s19   ;;  %s2505_s18 = sphi %s2624_s18, %s3457_s18  }
   0xe   : > { %3424 = sst [smem:[#allocation14_spill]] %s2513_s20  ;;  %s2127_s23 = sadd.s32 4294967294, %s2517_s21  }
   0xf   : > { %s2649_s24 = sadd.s32 1, %s2517_s21   ;;  %s39_s25 = sadd.s32 1, %s2513_s20 }
  0x10   : > { %3425 = sst [smem:[#allocation15_spill]] %s2649_s24  ;;  %s36_s26 = ssub.s32 %s2517_s21, %s2649_s24 }
  0x11   : > { %p46_p0 = scmp.ne.s32.totalorder %s2513_s20, %s2509_s19  ;;  %p37_p1 = scmp.eq.s32.totalorder %s36_s26, 0 }
  0x12   : > { %p47_p2 = scmp.eq.s32.totalorder %s2517_s21, 0  ;;  %p52_p3 = scmp.ne.s32.totalorder %s2509_s19, %s2505_s18 }
  0x13   : > { %p3400_p4 = scmp.eq.s32.totalorder %s2645_s22, 0  ;;  %p375_p7 = scmp.eq.s32.totalorder %s2645_s22, 1 }
  0x14   : > { %s2661_s27 = scalar_select %p37_p1, %s2513_s20, %s39_s25  }
  0x15   : > { %p2663_p5 = por %p47_p2, %p46_p0  ;;  %p2669_p6 = por %p3400_p4, %p52_p3 }
  0x16   : > { %3426 = sst [smem:[#allocation16_spill]] %s2661_s27  ;;  %p381_p8 = scmp.eq.s32.totalorder %s2127_s23, 1 }
  0x17   : > { %s3428_s29 = scalar_select %p2669_p6, 1, 0 }
  0x18   : > { %p2128_p9 = scmp.ge.s32.totalorder %s2517_s21, 1  ;;  %p388_p10 = scmp.lt.s32.totalorder %s2517_s21, 3 }
  0x19   : > { %p2676_p11 = por %p375_p7, %p46_p0  ;;  %p2680_p12 = por %p381_p8, %p52_p3 }
  0x1a   : > { %p2684_p13 = pnand %p2128_p9, %p388_p10  ;;  %s2519_s25 = smov [#allocation6]  }
  0x1b   : > { %s3429_s30 = scalar_select %p2676_p11, 1, 0 }
  0x1c   : > { %s3431_s16 = scalar_select %p2680_p12, 1, 0 }
  0x1d   : > { %3430 = sst [smem:[#allocation17_spill]] %s3429_s30  ;;  %p2236_p2 = pneg %p2684_p13 }
  0x1e   : > { %3432 = sst [smem:[#allocation18_spill]] %s3431_s16  ;;  %s404_s23 = sshll.u32 %s2519_s25, 4  ;;  %s405_s23 = int_to_ptr.vmem [resolvable:$true] %s404_s23 }
  0x1f   : > { %s3433_s17 = scalar_select %p2684_p13, 1, 0 }
  0x20   : > { %p2253_p4 = scmp.lt.s32.totalorder %s2517_s21, 2  ;;  %p3434_p0 = scmp.eq.s32.totalorder %s2645_s22, 0 }
  0x21   : > { %s2520_s24 = smov [#allocation8]   ;;  %s3437_s3 = sld [smem:[#allocation19_spill]] }
  0x22   : > { %p2694_p7 = pnand %p2236_p2, %p3434_p0  ;;  %p2700_p3 = pnand %p2253_p4, %p2663_p5 }
  0x23   : > { %s414_s16 = sshll.u32 %s2520_s24, 4  ;;  %s2704_s16 = int_to_ptr.vmem [resolvable:$true] %s414_s16 }
  0x24   : > { %s3436_s27 = scalar_select %p2700_p3, 1, 0 }
  0x25   : > { %p2363_p9 = pneg %p2694_p7 }
  0x27   : > { %s2361_s15 = scalar_lea.hbm %s3437_s3, 16 }
  0x28   : > { %p2362_p8 = scmp.ne.s32.totalorder %s3437_s3, %s2361_s15  ;;  %p2368_p10 = scmp.lt.u32.totalorder %s2361_s15, %s3437_s3 }
  0x2a   : > { %p2364_p4 = pnand %p2363_p9, %p2362_p8 }
  0x2c   : > { %p2365_p5 = pneg %p2364_p4 }
  0x2e   : > { %p2370_p2 = pnand %p2368_p10, %p2365_p5 }
  0x30   : > { %2373 = shalt.err (!%p2370_p2)
}
  0x31   : > { %s2374_s24 = scalar_lea.vmem %s405_s23, 16  ;;  %s2381_s14 = scalar_lea.vmem %s405_s23, 32 }
  0x32   : > { %p2375_p0 = scmp.ne.s32.totalorder %s405_s23, %s2374_s24  ;;  %p2382_p11 = scmp.lt.s32.totalorder %s405_s23, %s405_s23 }
  0x33   : > { %p2383_p6 = scmp.lt.s32.totalorder %s2381_s14, %s2374_s24 }
  0x34   : > { %p2377_p1 = pnand %p2375_p0, %p2363_p9 }
  0x35   : > { %p2384_p13 = por %p2383_p6, %p2382_p11 }
  0x36   : > { %p2378_p12 = pneg %p2377_p1 }
  0x38   : > { %p2385_p3 = pnand %p2384_p13, %p2378_p12 }
  0x3a   : > { %2388 = shalt.err (!%p2385_p3)
}
  0x3b   : > { %2239 = dma.hbm_to_vmem [thread:$0]  (!%p2694_p7), %s3437_s3, 16, %s405_s23, [#allocation7]  }
  0x3c   : > { %s458_s15 = sand.u32 1, %s2513_s20   ;;  %s2389_s28 = scalar_lea.hbm %s3388_s4, 256 }
  0x3d   : > { %p2390_p1 = scmp.ne.s32.totalorder %s3388_s4, %s2389_s28  ;;  %p2396_p12 = scmp.lt.u32.totalorder %s2389_s28, %s3388_s4 }
  0x3f   : > { %p2392_p6 = pnand %p2390_p1, %p2363_p9 }
  0x41   : > { %p2393_p11 = pneg %p2392_p6 }
  0x43   : > { %p2398_p13 = pnand %p2396_p12, %p2393_p11 }
  0x45   : > { %2401 = shalt.err (!%p2398_p13)
}
  0x46   : > { %s2402_s23 = scalar_lea.vmem %s2704_s16, 256  ;;  %p2410_p5 = scmp.lt.s32.totalorder %s2704_s16, %s2704_s16 }
  0x47   : > { %p2403_p3 = scmp.ne.s32.totalorder %s2704_s16, %s2402_s23  ;;  %p2411_p10 = scmp.lt.s32.totalorder %s2402_s23, %s2402_s23 }
  0x49   : > { %p2405_p8 = pnand %p2403_p3, %p2363_p9  ;;  %p2412_p2 = por %p2411_p10, %p2410_p5 }
  0x4b   : > { %p2406_p4 = pneg %p2405_p8 }
  0x4d   : > { %p2413_p0 = pnand %p2412_p2, %p2406_p4 }
  0x4f   : > { %2416 = shalt.err (!%p2413_p0)
}
  0x50   : > { %s2521_s11 = smov 128   ;;  %s2522_s12 = smov 8  }
  0x51   : > { %2242 = dma.hbm_to_vmem [thread:$0]  (!%p2694_p7), %s3388_s4, 256, %s2704_s16, [#allocation7], %s2521_s11, %s2521_s11, %s2522_s12  }
  0x52   : > { %s2132_s30 = sshll.u32 %s458_s15, 4  ;;  %s2178_s25 = sshll.u32 %s2517_s21, 8 }
  0x53   : > { %s2761_s14 = scalar_lea.hbm %s3384_s0, %s2178_s25  ;;  %s462_s23 = scalar_lea.vmem [#allocation3], %s2132_s30 }
  0x54   : > { %s469_s26 = sshll.u32 %s462_s23, 4  ;;  %s2765_s3 = scalar_lea.sflag [#allocation4], %s458_s15  ;;  %s2763_s26 = int_to_ptr.vmem [resolvable:$true] %s469_s26 }
  0x55   : > { %s2417_s20 = scalar_lea.hbm %s2761_s14, 256  ;;  %p3438_p7 = scmp.ne.s32.totalorder %s3436_s27, 0 }
  0x56   : > { %p2418_p9 = scmp.ne.s32.totalorder %s2761_s14, %s2417_s20  ;;  %s2422_s13 = scalar_lea.hbm %s3384_s0, 512 }
  0x57   : > { %p2419_p1 = pneg %p3438_p7  ;;  %p2423_p12 = scmp.lt.u32.totalorder %s2761_s14, %s3384_s0 }
  0x58   : > { %p2424_p13 = scmp.lt.u32.totalorder %s2422_s13, %s2417_s20  ;;  %p2426_p8 = scmp.lt.u32.totalorder %s2417_s20, %s2761_s14 }
  0x59   : > { %p2420_p6 = pnand %p2419_p1, %p2418_p9 }
  0x5a   : > { %p2425_p3 = por %p2424_p13, %p2423_p12 }
  0x5b   : > { %p2421_p11 = pneg %p2420_p6 }
  0x5c   : > { %p2427_p4 = por %p2426_p8, %p2425_p3 }
  0x5e   : > { %p2428_p5 = pnand %p2427_p4, %p2421_p11 }
  0x60   : > { %2431 = shalt.err (!%p2428_p5)
}
  0x61   : > { %s2432_s15 = scalar_lea.vmem %s2763_s26, 256  ;;  %s2523_s30 = smov [#allocation3]  }
  0x62   : > { %p2433_p10 = scmp.ne.s32.totalorder %s2763_s26, %s2432_s15  ;;  %s2437_s24 = sshll.u32 %s2523_s30, 4  ;;  %s2438_s24 = int_to_ptr.vmem [resolvable:$false] %s2437_s24 }
  0x63   : > { %s2439_s23 = scalar_lea.vmem %s2438_s24, 512  ;;  %p2440_p9 = scmp.lt.s32.totalorder %s2763_s26, %s2438_s24 }
  0x64   : > { %p2435_p2 = pnand %p2433_p10, %p2419_p1  ;;  %p2441_p6 = scmp.lt.s32.totalorder %s2439_s23, %s2432_s15 }
  0x66   : > { %p2436_p0 = pneg %p2435_p2  ;;  %p2442_p12 = por %p2441_p6, %p2440_p9 }
  0x68   : > { %p2443_p13 = pnand %p2442_p12, %p2436_p0 }
  0x6a   : > { %2446 = shalt.err (!%p2443_p13)
}
  0x6b   : > { %2246 = dma.hbm_to_vmem [thread:$0]  (!%p3438_p7), %s2761_s14, 256, %s2763_s26, %s2765_s3, %s2521_s11, %s2521_s11, %s2522_s12  }
  0x6c   : > { %p3439_p1 = scmp.ne.s32.totalorder %s3433_s17, 0 }
  0x6d   : > { %s2799_s20 = sand.u32 (!%p3439_p1), 1, %s2509_s19   ;;  %p3440_p11 = scmp.ne.s32.totalorder (!%p3439_p1), %s3428_s29, 0 }
  0x6e   : > { %489 = sbr.rel (%p3439_p1) target bundleno = 3173 (0xc65), region = 80  ;;  %s2136_s16 = sshll.u32 (!%p3439_p1), %s2799_s20, 4 }
  0x6f   : > { %s492_s18 = scalar_lea.sflag (!%p3439_p1), [#allocation4], %s2799_s20  ;;  %s495_s13 = scalar_lea.vmem (!%p3439_p1), [#allocation3], %s2136_s16 }
  0x75   : > { %2492 = dma.done.wait (%p3440_p11), %s492_s18, 256  }
  0x76   : > { %2494 = vsyncadd (%p3440_p11), %s492_s18, 4294967040  ;;  %p3441_p3 = scmp.eq.s32.totalorder %s2645_s22, 0 }
  0x78   : > { %2496 = dma.done.wait (%p3441_p3), [#allocation7], 272   ;;  %p3442_p7 = pmov %p3441_p3 }
  0x79   : > { %p555_p8 = scmp.lt.s32.totalorder %s2645_s22, 1  ;;  %v2151_v2 = vld [vmem:[#allocation6] ss:$0 sm:$0xff]  ;;  %vm648_vm0 = vcmask 523264   ;;  %v602_v8 = vld [vmem:[%s495_s13 + $0x8] sm:$0xff]  ;;  %v2524_v22 = vmov 0   ;;  %v991_v61 = vlaneseq }
  0x7a   : > { %2498 = vsyncadd (%p3442_p7), [#allocation7], 4294967024  ;;  %v601_v4 = vld [vmem:[%s495_s13] sm:$0xff]  ;;  %v711_v10 = vmul.f32 %v2151_v2, %v602_v8  ;;  %684 = vmatprep.mubr.bf16.mxu0 %v2524_v22  ;;  %2313 = vset.pattern.permute.xlu1 %v2524_v22  ;;  %v2525_v23 = vmov 0.0|0.0   ;;  %vm2526_vm1 = vmmov 0   ;;  %v2527_v24 = vmov 0.0  }
  0x7b   : > { %s556_s3 = scalar_select %p555_p8, %s2645_s22, 1  ;;  %v710_v7 = vmul.f32 %v2151_v2, %v601_v4  ;;  %v2314_v11 = vld [vmem:[%s3386_s2 + $0x4] ss:$8 sps:$4 sm:$0xff]   ;;  %v2316_v12 = vld [vmem:[%s3386_s2] ss:$8 sps:$4 sm:$0xff]   ;;  %v607_v21 = vpack.c.bf16 %v602_v8, %v601_v4  ;;  %2312 = vset.pattern.permute.xlu0 %v2524_v22  ;;  %vm718_vm2 = vcmask 261120  }
  0x7c   : > { %v2317_v14 = vld [vmem:[%s3386_s2 + $0x14] ss:$8 sps:$4 sm:$0xff]   ;;  %652 = vmatprep.subr.bf16.mxu0 %v2314_v11  ;;  %v2319_v15 = vld [vmem:[%s3386_s2 + $0x10] ss:$8 sps:$4 sm:$0xff]   ;;  %v715_v16 = vsel %vm648_vm0, %v711_v10, 0.0  ;;  %v573_v38 = vld [vmem:[%s3390_s6] sm:$0xff] }
  0x7d   : > { %s2179_s27 = sshll.u32 %s556_s3, 5  ;;  %v712_v13 = vsel %vm648_vm0, %v710_v7, 0.0  ;;  %653 = vmatpush1.bf16.msra.mxu0 %v2316_v12  ;;  %v2320_v17 = vld [vmem:[%s3386_s2 + $0x24] ss:$8 sps:$4 sm:$0xff]   ;;  %v2322_v18 = vld [vmem:[%s3386_s2 + $0x20] ss:$8 sps:$4 sm:$0xff]  }
  0x7e   : > { %s559_s12 = scalar_lea.vmem %s3385_s1, %s2179_s27  ;;  %713 = vadd.xlane.f32.xlu1 %v712_v13  ;;  %654 = vmatprep.subr.bf16.mxu0 %v2317_v14  ;;  %v2323_v19 = vld [vmem:[%s3386_s2 + $0x34] ss:$8 sps:$4 sm:$0xff]   ;;  %v2325_v20 = vld [vmem:[%s3386_s2 + $0x30] ss:$8 sps:$4 sm:$0xff]   ;;  %v572_v33 = vld [vmem:[%s3389_s5] sm:$0x3] }
  0x7f   : > { %v2816_v0 = vld [vmem:[%s559_s12] sm:$0xff]  ;;  %v2818_v1 = vld [vmem:[%s559_s12 + $0x8] sm:$0xff]  ;;  %v2822_v5 = vld [vmem:[%s559_s12 + $0x10] sm:$0xff]  ;;  %vm793_vm3 = vcmask 15360   ;;  %vm806_vm4 = vcmask 1041408   ;;  %v2887_v2 = vshrl.u32 %v991_v61, 7 }
  0x80   : > { %v695_v3 = vadd.f32 %v2818_v1, %v2816_v0  ;;  %v2824_v6 = vld [vmem:[%s559_s12 + $0x18] sm:$0xff]  ;;  %2204 = vmatprep.mubr.msk.f32.mxu1 %vm793_vm3, %v573_v38  ;;  %v574_v42 = vld [vmem:[%s3390_s6 + $0x8] sm:$0xff]  ;;  %v575_v43 = vld [vmem:[%s3390_s6 + $0x10] sm:$0xff]  ;;  %s2528_s16 = smov 2   ;;  %s2529_s18 = smov 16   ;;  %vm595_vm5 = vcmask 138240  }
  0x81   : > { %v698_v9 = vadd.f32 %v2824_v6, %v2822_v5  ;;  %655 = vmatpush1.bf16.msra.mxu0 %v2319_v15  ;;  %v576_v44 = vld [vmem:[%s3390_s6 + $0x18] sm:$0xff]  ;;  %v2892_v4 = vsub.s32 1, %v2887_v2  ;;  %v1066_v14 = vsub.s32 2, %v2887_v2  ;;  %s2530_s13 = smov 18   ;;  %s2531_s3 = smov 32   ;;  %596 = vst.msk [vmem:[#allocation2] sm:$0xff] %vm595_vm5, %v2524_v22 }
  0x82   : > { %696 = vadd.xlane.f32.xlu0 %v695_v3  ;;  %716 = vadd.xlane.f32.xlu1 %v715_v16  ;;  %v570_v62 = vld [vmem:[#allocation8] sm:$0xff]  ;;  %s2532_s27 = smov 34   ;;  %597 = vst.msk [vmem:[#allocation2 + $0x18] sm:$0xff] %vm595_vm5, %v2524_v22  ;;  %vm598_vm6 = vcmask 277640   ;;  %s2533_s17 = smov 17   ;;  %vm946_vm7 = vcmask 1047688  }
  0x83   : > { %656 = vmatprep.subr.bf16.mxu0 %v2320_v17  ;;  %v2163_v63 = vcombine.high %v570_v62, %v570_v62  ;;  %v1091_v17 = vsub.s32 3, %v2887_v2  ;;  %599 = vst.msk [vmem:[#allocation2 + $0x10] sm:$0xff] %vm598_vm6, %v2524_v22  ;;  %600 = vst.msk [vmem:[#allocation2 + $0x28] sm:$0xff] %vm598_vm6, %v2524_v22  ;;  %s2534_s11 = smov 127   ;;  %s2535_s12 = smov 111   ;;  %vm1053_vm8 = vcmask 130048  }
  0x84   : > { %s2536_s29 = smov 126   ;;  %s2537_s14 = smov 112   ;;  %vm1078_vm9 = vcmask 146432   ;;  %vm1139_vm10 = vcmask 277504   ;;  %vm1168_vm11 = vcmask 1039360   ;;  %vm1195_vm12 = vcmask 1031168  }
  0x85   : > { %657 = vmatpush1.bf16.msra.mxu0 %v2322_v18  ;;  %v2889_v3 = vpack.i.b16 %v2163_v63, %v2163_v63  ;;  %v1040_v8 = vshrl.u32 %v2163_v63, 16  ;;  %v571_v18 = vld [vmem:[#allocation8 + $0x8] sm:$0x11]  ;;  %s2538_s26 = smov 110   ;;  %s2539_s25 = smov 96   ;;  %vm1222_vm13 = vcmask 916480  }
  0x86   : > { %699 = vadd.xlane.f32.xlu0 %v698_v9  ;;  %658 = vmatprep.subr.bf16.mxu0 %v2323_v19  ;;  %v2165_v19 = vcombine.high %v571_v18, %v571_v18  ;;  %s2540_s28 = smov 95   ;;  %s2541_s15 = smov 94   ;;  %vm1243_vm14 = vcmask 908288   ;;  %vm1270_vm15 = vcmask 900096  }
  0x87   : > { %v1015_v10 = vrot.slane %v2889_v3, %v2892_v4  ;;  %v1041_v11 = vpack.i.b16 %v1040_v8, %v1040_v8  ;;  %s3445_s30 = sld [smem:[#allocation22_spill]]  ;;  %s3448_s23 = sld [smem:[#allocation24_spill]] }
  0x89   : > { %659 = vmatpush1.bf16.msra.mxu0 %v2325_v20  ;;  %v1046_v13 = vrot.slane %v1041_v11, %v2892_v4  ;;  %v1071_v16 = vrot.slane %v1041_v11, %v1066_v14  ;;  %v1096_v20 = vrot.slane %v2889_v3, %v1091_v17 }
  0x8a   : > { %2210 = vmatprep.subr.bf16.mxu0 %v2525_v23 }
  0x8c   : > { %2150 = vmatmul.mubr.msk.bf16.vlgmr.msra.gmra.mrb[0].mxu0 %vm648_vm0, %v607_v21  ;;  %v993_v21 = vsub.s32 0, %v2887_v2  ;;  %vm1297_vm0 = vcmask 785408  }
  0x8d   : > { %2199 = vmatprep.mubr.msk.f32.mxu0 %vm2526_vm1, %v2527_v24  ;;  %vm1345_vm1 = vcmask 769024  }
 0x10b   : > { %v714_v26 = vpop.xlane.xlu1 %713 }
 0x10f   : > { %v697_v25 = vpop.xlane.xlu0 %696  ;;  %v717_v31 = vpop.xlane.xlu1 %716 }
 0x110   : > { %v702_v28 = vmul.f32 0.00390625, %v697_v25  ;;  %v2214_v32 = vpack.c.bf16 %v717_v31, %v714_v26  ;;  %v2162_v25 = vcombine.low %v570_v62, %v570_v62 }
 0x112   : > { %v1033_v26 = vshrl.u32 %v2162_v25, 16 }
 0x113   : > { %v700_v27 = vpop.xlane.xlu0 %699 }
 0x114   : > { %v703_v29 = vmul.f32 0.00390625, %v700_v27  ;;  %v1034_v27 = vpack.i.b16 %v1033_v26, %v1033_v26 }
 0x116   : > { %v2211_v30 = vpack.c.bf16 %v703_v29, %v702_v28  ;;  %v1039_v28 = vrot.slane %v1034_v27, %v2892_v4  ;;  %v1067_v29 = vrot.slane %v1034_v27, %v1066_v14 }
 0x118   : > { %2212 = vmatpush3.bf16.msra.mxu0 %v2211_v30 }
 0x119   : > { %2213 = vmatprep.subr.bf16.mxu0 %v2525_v23  ;;  %v1127_v23 = vpack.i.b16 %v2165_v19, %v2165_v19 }
 0x11b   : > { %v1132_v24 = vrot.slane %v1127_v23, %v993_v21 }
 0x11c   : > { %2215 = vmatpush3.bf16.msra.mxu0 %v2214_v32 }
 0x11f   : > { %2200 = vmatmul.mubr.msk.f32.vlgmr.msra.gmra.mrb[4].mxu0 %vm718_vm2, %v572_v33 }
 0x120   : > { %1457 = vmatprep.mubr.bf16.mxu0 %v2524_v22 }
 0x15f   : > { %v2863_v34 = vpop.f32.mrb[0].mxu0 }
 0x160   : > { %v2865_v35 = vpop.f32.mrb[1].mxu0 }
 0x161   : > { %v2867_v36 = vpop.f32.mrb[2].mxu0 }
 0x162   : > { %v2869_v37 = vpop.f32.mrb[3].mxu0 }
 0x1f2   : > { %v788_v39 = vpop.f32.mrb[4].mxu0 }
 0x1f3   : > { %v792_v40 = vmax.f32 %v788_v39, 0.0  ;;  %v2201_v41 = vpop.f32.mrb[5].mxu0 }
 0x1f5   : > { %2202 = vmatprep.subr.msk.mxu1 %vm806_vm4, %v792_v40 }
 0x1f6   : > { %2203 = vmatpush3.msk.msra.mxu1 %vm806_vm4, %v792_v40 }
 0x1f7   : > { %2205 = vmatmul.mubr.msk.f32.vlgmr.msra.gmra.mrb[0].mxu1 %vm793_vm3, %v574_v42 }
 0x1f8   : > { %2207 = vmatprep.mubr.msk.f32.mxu1 %vm793_vm3, %v575_v43 }
 0x1fb   : > { %2208 = vmatmul.mubr.msk.f32.gmra.mrb[2].mxu1 %vm793_vm3, %v576_v44 }
 0x2ca   : > { %v2206_v45 = vpop.f32.mrb[0].mxu1 }
 0x2cb   : > { %v2159_v46 = vmul.f32 -1.442695, %v2206_v45  ;;  %v876_v47 = vpop.f32.mrb[1].mxu1 }
 0x2cc   : > { %v2158_v48 = vmul.f32 -1.442695, %v876_v47 }
 0x2cd   : > { %2337 = vpow2.f32 %v2159_v46 }
 0x2ce   : > { %2339 = vpow2.f32 %v2158_v48  ;;  %v2209_v49 = vpop.f32.mrb[2].mxu1  ;;  %v2933_v48 = vrot.slane %v2889_v3, %v993_v21 }
 0x2cf   : > { %v2161_v50 = vmul.f32 -1.442695, %v2209_v49  ;;  %v886_v51 = vpop.f32.mrb[3].mxu1 }
 0x2d0   : > { %v2160_v52 = vmul.f32 -1.442695, %v886_v51 }
 0x2d1   : > { %2341 = vpow2.f32 %v2161_v50 }
 0x2d2   : > { %2343 = vpow2.f32 %v2160_v52 }
 0x2d7   : > { %v2338_v53 = vpop.eup %2337 }
 0x2d8   : > { %v2340_v54 = vpop.eup %2339  ;;  %v908_v55 = vadd.f32 1.0, %v2338_v53 }
 0x2d9   : > { %v907_v56 = vadd.f32 1.0, %v2340_v54 }
 0x2da   : > { %2345 = vrcp.f32 %v908_v55 }
 0x2db   : > { %v2342_v57 = vpop.eup %2341  ;;  %2347 = vrcp.f32 %v907_v56 }
 0x2dc   : > { %v2344_v58 = vpop.eup %2343  ;;  %v910_v59 = vadd.f32 1.0, %v2342_v57 }
 0x2dd   : > { %v909_v60 = vadd.f32 1.0, %v2344_v58 }
 0x2df   : > { %2349 = vrcp.f32 %v909_v60 }
 0x2e0   : > { %2351 = vrcp.f32 %v910_v59 }
 0x2e4   : > { %v2346_v7 = vpop.eup %2345 }
 0x2e5   : > { %v2348_v9 = vpop.eup %2347  ;;  %926 = vperm.xlu1 %2313, %v2346_v7  }
 0x2e6   : > { %921 = vperm.xlu0 %2312, %v2348_v9  }
 0x2e9   : > { %v2350_v12 = vpop.eup %2349 }
 0x2ea   : > { %952 = vperm.xlu1 %2313, %v2350_v12   ;;  %1020 = vrot.lane.b32.xlu0 %v1015_v10, %s2528_s16  ;;  %v2352_v15 = vpop.eup %2351 }
 0x2ee   : > { %957 = vperm.xlu1 %2313, %v2352_v15   ;;  %1051 = vrot.lane.b32.xlu0 %v1046_v13, %s2529_s18 }
 0x2f2   : > { %1076 = vrot.lane.b32.xlu0 %v1071_v16, %s2530_s13 }
 0x2f6   : > { %1101 = vrot.lane.b32.xlu0 %v1096_v20, %s2531_s3 }
 0x2fa   : > { %1137 = vrot.lane.b32.xlu0 %v1132_v24, %s2532_s27 }
 0x364   : > { %v927_v30 = vpop.permute.xlu1 %926 }
 0x365   : > { %v931_v31 = vmul.f32 %v927_v30, %v2822_v5  ;;  %v922_v32 = vpop.permute.xlu0 %921  ;;  %v932_v38 = vmul.f32 %v927_v30, %v2824_v6 }
 0x366   : > { %v929_v33 = vmul.f32 %v922_v32, %v2816_v0  ;;  %v930_v39 = vmul.f32 %v922_v32, %v2818_v1  ;;  %v989_v1 = vpack.i.b16 %v2162_v25, %v2162_v25 }
 0x368   : > { %v933_v40 = vpack.c.bf16 %v931_v31, %v929_v33  ;;  %v934_v42 = vpack.c.bf16 %v932_v38, %v930_v39  ;;  %v1011_v46 = vrot.slane %v989_v1, %v2892_v4  ;;  %v2939_v51 = vrot.slane %v989_v1, %v993_v21 }
 0x369   : > { %v953_v41 = vpop.permute.xlu1 %952  ;;  %v2960_v59 = vpop.permute.xlu0 %1020 }
 0x36a   : > { %937 = vrot.lane.b32.xlu1 %v933_v40, %s2533_s17  ;;  %v960_v44 = vmul.f32 %v953_v41, %v2863_v34  ;;  %v961_v22 = vmul.f32 %v953_v41, %v2865_v35  ;;  %v2164_v34 = vcombine.low %v571_v18, %v571_v18  ;;  %v1092_v35 = vrot.slane %v989_v1, %v1091_v17  ;;  %v2332_v1 = vld [vmem:[%s3391_s7 + $0x4] ss:$12 sps:$4 sm:$0xff]  }
 0x36b   : > { %1414 = vmatprep.mubr.bf16.mxu1 %v2332_v1 }
 0x36d   : > { %v958_v43 = vpop.permute.xlu1 %957  ;;  %v2976_v3 = vpop.permute.xlu0 %1051 }
 0x36e   : > { %v962_v5 = vmul.f32 %v958_v43, %v2867_v36  ;;  %v963_v45 = vmul.f32 %v958_v43, %v2869_v37  ;;  %939 = vrot.lane.b32.xlu1 %v934_v42, %s2533_s17  ;;  %v1120_v36 = vpack.i.b16 %v2164_v34, %v2164_v34 }
 0x370   : > { %v964_v0 = vpack.c.bf16 %v962_v5, %v960_v44  ;;  %v965_v6 = vpack.c.bf16 %v963_v45, %v961_v22  ;;  %v1125_v37 = vrot.slane %v1120_v36, %v993_v21 }
 0x371   : > { %v2989_v9 = vpop.permute.xlu0 %1076 }
 0x372   : > { %968 = vrot.lane.b32.xlu1 %v964_v0, %s2533_s17 }
 0x375   : > { %v3043_v25 = vpop.permute.xlu0 %1101 }
 0x376   : > { %970 = vrot.lane.b32.xlu1 %v965_v6, %s2533_s17 }
 0x379   : > { %v3079_v42 = vpop.permute.xlu0 %1137 }
 0x37a   : > { %1018 = vrot.lane.b32.xlu1 %v1011_v46, %s2528_s16 }
 0x37e   : > { %1049 = vrot.lane.b32.xlu1 %v1039_v28, %s2529_s18 }
 0x382   : > { %1074 = vrot.lane.b32.xlu1 %v1067_v29, %s2530_s13 }
 0x386   : > { %1099 = vrot.lane.b32.xlu1 %v1092_v35, %s2531_s3  ;;  %v583_v35 = vld [vmem:[%s3392_s8] sm:$0xff]  ;;  %s3447_s3 = sld [smem:[#allocation17_spill]] }
 0x38a   : > { %1135 = vrot.lane.b32.xlu1 %v1125_v37, %s2532_s27  ;;  %v584_v37 = vld [vmem:[%s3392_s8 + $0x8] sm:$0xff] }
 0x38c   : > { %p3449_p5 = scmp.ne.s32.totalorder %s3447_s3, 0 }
 0x3dc   : > { %v938_v47 = vpop.permute.xlu1 %937 }
 0x3dd   : > { %947 = vst.msk [vmem:[#allocation2] sm:$0xff] %vm946_vm7, %v938_v47 }
 0x3e0   : > { %v940_v49 = vpop.permute.xlu1 %939 }
 0x3e1   : > { %v2936_v50 = vsel %vm595_vm5, %v938_v47, %v940_v49  ;;  %949 = vst.msk [vmem:[#allocation2 + $0x10] sm:$0xff] %vm595_vm5, %v940_v49 }
 0x3e2   : > { %v1003_v52 = vmul.bf16 %v2933_v48, %v2936_v50 }
 0x3e4   : > { %v969_v53 = vpop.permute.xlu1 %968  ;;  %v2943_v54 = vld [vmem:[#allocation2] sm:$0xff]  ;;  %1382 = vmatprep.subr.bf16.mxu1 %v1003_v52 }
 0x3e5   : > { %976 = vst.msk [vmem:[#allocation2 + $0x18] sm:$0xff] %vm946_vm7, %v969_v53  ;;  %1156 = vrot.lane.b32.xlu1 %v2943_v54, %s2534_s11  ;;  %v1002_v55 = vmul.bf16 %v2939_v51, %v2943_v54 }
 0x3e7   : > { %1383 = vmatpush1.bf16.msra.mxu1 %v1002_v55 }
 0x3e8   : > { %v971_v56 = vpop.permute.xlu1 %970  ;;  %v2950_v57 = vld [vmem:[#allocation2 + $0x10] sm:$0xff] }
 0x3e9   : > { %v2953_v58 = vsel %vm595_vm5, %v969_v53, %v971_v56  ;;  %978 = vst.msk [vmem:[#allocation2 + $0x28] sm:$0xff] %vm595_vm5, %v971_v56  ;;  %1231 = vrot.lane.b32.xlu1 %v2943_v54, %s2535_s12  ;;  %1160 = vrot.lane.b32.xlu0 %v2950_v57, %s2534_s11  ;;  %v1029_v2 = vmul.bf16 %v2960_v59, %v2950_v57 }
 0x3ea   : > { %v1005_v60 = vmul.bf16 %v2933_v48, %v2953_v58  ;;  %v1060_v7 = vmul.bf16 %v2976_v3, %v2950_v57  ;;  %v1085_v10 = vmul.bf16 %v2989_v9, %v2950_v57  ;;  %v1110_v31 = vmul.bf16 %v3043_v25, %v2950_v57 }
 0x3eb   : > { %v1146_v45 = vmul.bf16 %v3079_v42, %v2950_v57 }
 0x3ec   : > { %v2964_v61 = vpop.permute.xlu1 %1018  ;;  %1384 = vmatprep.subr.bf16.mxu1 %v1005_v60  ;;  %v2966_v62 = vld [vmem:[#allocation2 + $0x18] sm:$0xff] }
 0x3ed   : > { %1235 = vrot.lane.b32.xlu0 %v2950_v57, %s2535_s12  ;;  %1158 = vrot.lane.b32.xlu1 %v2936_v50, %s2534_s11  ;;  %v1004_v63 = vmul.bf16 %v2939_v51, %v2966_v62  ;;  %v1027_v8 = vmul.bf16 %v2964_v61, %v2943_v54  ;;  %v3004_v14 = vsel %vm793_vm3, %v2964_v61, %v2960_v59  ;;  %vm1318_vm3 = vcmask 777216  }
 0x3ee   : > { %v1028_v15 = vmul.bf16 %v3004_v14, %v2936_v50  ;;  %v1030_v20 = vmul.bf16 %v2964_v61, %v2966_v62  ;;  %v1031_v29 = vmul.bf16 %v3004_v14, %v2953_v58 }
 0x3ef   : > { %1385 = vmatpush1.bf16.msra.mxu1 %v1004_v63 }
 0x3f0   : > { %v2981_v4 = vpop.permute.xlu1 %1049  ;;  %v1007_v21 = vld [vmem:[#allocation2 + $0x28] sm:$0xff] }
 0x3f1   : > { %1187 = vrot.lane.b32.xlu0 %v1029_v2, %s2536_s29  ;;  %1233 = vrot.lane.b32.xlu1 %v2936_v50, %s2535_s12  ;;  %v1058_v11 = vmul.bf16 %v2981_v4, %v2943_v54  ;;  %v3014_v16 = vsel %vm1053_vm8, %v2981_v4, %v2976_v3  ;;  %v1061_v23 = vmul.bf16 %v2981_v4, %v2966_v62 }
 0x3f2   : > { %v1059_v17 = vmul.bf16 %v3014_v16, %v2936_v50  ;;  %v1032_v27 = vmul.bf16 %v2960_v59, %v1007_v21  ;;  %v1063_v32 = vmul.bf16 %v2976_v3, %v1007_v21  ;;  %v1062_v33 = vmul.bf16 %v3014_v16, %v2953_v58 }
 0x3f3   : > { %v1088_v38 = vmul.bf16 %v2989_v9, %v1007_v21  ;;  %v1113_v43 = vmul.bf16 %v3043_v25, %v1007_v21  ;;  %v1149_v46 = vmul.bf16 %v3079_v42, %v1007_v21 }
 0x3f4   : > { %v2995_v12 = vpop.permute.xlu1 %1074 }
 0x3f5   : > { %1214 = vrot.lane.b32.xlu0 %v1060_v7, %s2537_s14  ;;  %1183 = vrot.lane.b32.xlu1 %v1027_v8, %s2536_s29  ;;  %v1083_v13 = vmul.bf16 %v2995_v12, %v2943_v54  ;;  %v3023_v18 = vsel %vm1078_vm9, %v2995_v12, %v2989_v9  ;;  %v1086_v26 = vmul.bf16 %v2995_v12, %v2966_v62 }
 0x3f6   : > { %v1084_v19 = vmul.bf16 %v3023_v18, %v2936_v50  ;;  %v1087_v5 = vmul.bf16 %v3023_v18, %v2953_v58 }
 0x3f8   : > { %v3039_v24 = vpop.permute.xlu1 %1099 }
 0x3f9   : > { %1262 = vrot.lane.b32.xlu0 %v1085_v10, %s2538_s26  ;;  %1210 = vrot.lane.b32.xlu1 %v1058_v11, %s2537_s14  ;;  %v3051_v28 = vsel %vm718_vm2, %v3039_v24, %v3043_v25  ;;  %v1111_v39 = vmul.bf16 %v3039_v24, %v2966_v62  ;;  %v1108_v40 = vmul.bf16 %v3039_v24, %v2943_v54 }
 0x3fa   : > { %v1109_v30 = vmul.bf16 %v3051_v28, %v2936_v50  ;;  %v1112_v6 = vmul.bf16 %v3051_v28, %v2953_v58 }
 0x3fc   : > { %v3075_v41 = vpop.permute.xlu1 %1135 }
 0x3fd   : > { %1162 = vrot.lane.b32.xlu0 %v2966_v62, %s2534_s11  ;;  %1258 = vrot.lane.b32.xlu1 %v1083_v13, %s2538_s26  ;;  %v3084_v44 = vsel %vm1139_vm10, %v3075_v41, %v3079_v42  ;;  %v1144_v0 = vmul.bf16 %v3075_v41, %v2943_v54  ;;  %v1147_v36 = vmul.bf16 %v3075_v41, %v2966_v62 }
 0x3fe   : > { %v1145_v22 = vmul.bf16 %v3084_v44, %v2936_v50  ;;  %v1148_v34 = vmul.bf16 %v3084_v44, %v2953_v58 }
 0x401   : > { %1237 = vrot.lane.b32.xlu0 %v2966_v62, %s2535_s12  ;;  %1185 = vrot.lane.b32.xlu1 %v1028_v15, %s2536_s29 }
 0x405   : > { %1164 = vrot.lane.b32.xlu0 %v2953_v58, %s2534_s11  ;;  %1212 = vrot.lane.b32.xlu1 %v1059_v17, %s2537_s14 }
 0x409   : > { %1239 = vrot.lane.b32.xlu0 %v2953_v58, %s2535_s12  ;;  %1260 = vrot.lane.b32.xlu1 %v1084_v19, %s2538_s26 }
 0x40d   : > { %1189 = vrot.lane.b32.xlu0 %v1030_v20, %s2536_s29  ;;  %1166 = vrot.lane.b32.xlu1 %v1007_v21, %s2534_s11 }
 0x411   : > { %1216 = vrot.lane.b32.xlu0 %v1061_v23, %s2537_s14  ;;  %1241 = vrot.lane.b32.xlu1 %v1007_v21, %s2535_s12 }
 0x415   : > { %1264 = vrot.lane.b32.xlu0 %v1086_v26, %s2538_s26  ;;  %1193 = vrot.lane.b32.xlu1 %v1032_v27, %s2536_s29 }
 0x419   : > { %1191 = vrot.lane.b32.xlu0 %v1031_v29, %s2536_s29  ;;  %1287 = vrot.lane.b32.xlu1 %v1109_v30, %s2539_s25 }
 0x41d   : > { %1289 = vrot.lane.b32.xlu0 %v1110_v31, %s2539_s25  ;;  %1220 = vrot.lane.b32.xlu1 %v1063_v32, %s2537_s14 }
 0x421   : > { %1218 = vrot.lane.b32.xlu0 %v1062_v33, %s2537_s14  ;;  %1268 = vrot.lane.b32.xlu1 %v1088_v38, %s2538_s26 }
 0x425   : > { %1291 = vrot.lane.b32.xlu0 %v1111_v39, %s2539_s25  ;;  %1285 = vrot.lane.b32.xlu1 %v1108_v40, %s2539_s25 }
 0x429   : > { %1310 = vrot.lane.b32.xlu0 %v2950_v57, %s2540_s28  ;;  %1295 = vrot.lane.b32.xlu1 %v1113_v43, %s2539_s25 }
 0x42d   : > { %1308 = vrot.lane.b32.xlu1 %v2936_v50, %s2540_s28  ;;  %1335 = vrot.lane.b32.xlu0 %v1145_v22, %s2541_s15 }
 0x431   : > { %1306 = vrot.lane.b32.xlu1 %v2943_v54, %s2540_s28  ;;  %1266 = vrot.lane.b32.xlu0 %v1087_v5, %s2538_s26 }
 0x435   : > { %1337 = vrot.lane.b32.xlu1 %v1146_v45, %s2541_s15  ;;  %1333 = vrot.lane.b32.xlu0 %v1144_v0, %s2541_s15 }
 0x439   : > { %1314 = vrot.lane.b32.xlu1 %v2953_v58, %s2540_s28  ;;  %1293 = vrot.lane.b32.xlu0 %v1112_v6, %s2539_s25 }
 0x43d   : > { %1312 = vrot.lane.b32.xlu1 %v2966_v62, %s2540_s28  ;;  %1316 = vrot.lane.b32.xlu0 %v1007_v21, %s2540_s28 }
 0x441   : > { %1343 = vrot.lane.b32.xlu1 %v1149_v46, %s2541_s15  ;;  %1341 = vrot.lane.b32.xlu0 %v1148_v34, %s2541_s15 }
 0x445   : > { %1356 = vperm.xlu1 %2313, %v583_v35   ;;  %1339 = vrot.lane.b32.xlu0 %v1147_v36, %s2541_s15 }
 0x449   : > { %1361 = vperm.xlu0 %2312, %v584_v37  }
 0x457   : > { %v1157_v47 = vpop.permute.xlu1 %1156 }
 0x45b   : > { %v1161_v49 = vpop.permute.xlu0 %1160  ;;  %v1232_v50 = vpop.permute.xlu1 %1231 }
 0x45f   : > { %v1236_v52 = vpop.permute.xlu0 %1235  ;;  %v1159_v53 = vpop.permute.xlu1 %1158 }
 0x460   : > { %v1169_v54 = vsel %vm1168_vm11, %v1157_v47, %v1159_v53  ;;  %v1170_v55 = vsel %vm1168_vm11, %v1159_v53, %v1161_v49 }
 0x461   : > { %1386 = vmatprep.subr.bf16.mxu1 %v1170_v55 }
 0x462   : > { %1387 = vmatpush1.bf16.msra.mxu1 %v1169_v54 }
 0x463   : > { %v1188_v56 = vpop.permute.xlu0 %1187  ;;  %v1234_v57 = vpop.permute.xlu1 %1233 }
 0x464   : > { %v1245_v34 = vsel %vm1243_vm14, %v1234_v57, %v1236_v52  ;;  %v1244_v37 = vsel %vm1243_vm14, %v1232_v50, %v1234_v57 }
 0x467   : > { %v1215_v58 = vpop.permute.xlu0 %1214  ;;  %v1184_v60 = vpop.permute.xlu1 %1183 }
 0x46b   : > { %v1263_v62 = vpop.permute.xlu0 %1262  ;;  %v1211_v63 = vpop.permute.xlu1 %1210 }
 0x46f   : > { %v1163_v2 = vpop.permute.xlu0 %1162  ;;  %v1259_v7 = vpop.permute.xlu1 %1258 }
 0x473   : > { %v1238_v8 = vpop.permute.xlu0 %1237  ;;  %v1186_v10 = vpop.permute.xlu1 %1185 }
 0x474   : > { %v1197_v26 = vsel %vm1195_vm12, %v1186_v10, %v1188_v56  ;;  %v1196_v30 = vsel %vm1195_vm12, %v1184_v60, %v1186_v10 }
 0x477   : > { %v1165_v11 = vpop.permute.xlu0 %1164  ;;  %v1213_v13 = vpop.permute.xlu1 %1212 }
 0x478   : > { %v1171_v23 = vsel %vm1168_vm11, %v1163_v2, %v1165_v11  ;;  %v1224_v43 = vsel %vm1222_vm13, %v1213_v13, %v1215_v58  ;;  %v1223_v45 = vsel %vm1222_vm13, %v1211_v63, %v1213_v13 }
 0x47b   : > { %v1240_v15 = vpop.permute.xlu0 %1239  ;;  %v1261_v17 = vpop.permute.xlu1 %1260 }
 0x47c   : > { %v1246_v54 = vsel %vm1243_vm14, %v1238_v8, %v1240_v15  ;;  %v1272_v55 = vsel %vm1270_vm15, %v1261_v17, %v1263_v62  ;;  %v1271_v58 = vsel %vm1270_vm15, %v1259_v7, %v1261_v17 }
 0x47f   : > { %v1190_v19 = vpop.permute.xlu0 %1189  ;;  %v1167_v20 = vpop.permute.xlu1 %1166 }
 0x480   : > { %v1172_v21 = vsel %vm1168_vm11, %v1165_v11, %v1167_v20 }
 0x481   : > { %1388 = vmatprep.subr.bf16.mxu1 %v1172_v21 }
 0x482   : > { %1389 = vmatpush1.bf16.msra.mxu1 %v1171_v23 }
 0x483   : > { %v1217_v27 = vpop.permute.xlu0 %1216  ;;  %1390 = vmatprep.subr.bf16.mxu1 %v1197_v26  ;;  %v1242_v29 = vpop.permute.xlu1 %1241 }
 0x484   : > { %v1247_v47 = vsel %vm1243_vm14, %v1240_v15, %v1242_v29 }
 0x486   : > { %1391 = vmatpush1.bf16.msra.mxu1 %v1196_v30 }
 0x487   : > { %v1265_v31 = vpop.permute.xlu0 %1264  ;;  %v1194_v32 = vpop.permute.xlu1 %1193 }
 0x48b   : > { %v1192_v33 = vpop.permute.xlu0 %1191  ;;  %v1288_v38 = vpop.permute.xlu1 %1287 }
 0x48c   : > { %v1198_v39 = vsel %vm1195_vm12, %v1190_v19, %v1192_v33  ;;  %v1199_v40 = vsel %vm1195_vm12, %v1192_v33, %v1194_v32  ;;  %v2330_v33 = vld [vmem:[%s3391_s7] ss:$12 sps:$4 sm:$0xff]  }
 0x48d   : > { %1392 = vmatprep.subr.bf16.mxu1 %v1199_v40  ;;  %v2333_v40 = vld [vmem:[%s3391_s7 + $0x8] ss:$12 sps:$4 sm:$0xff]  }
 0x48e   : > { %1393 = vmatpush1.bf16.msra.mxu1 %v1198_v39 }
 0x48f   : > { %v1290_v22 = vpop.permute.xlu0 %1289  ;;  %1394 = vmatprep.subr.bf16.mxu1 %v1224_v43  ;;  %v1221_v5 = vpop.permute.xlu1 %1220 }
 0x490   : > { %v1299_v2 = vsel %vm1297_vm0, %v1288_v38, %v1290_v22 }
 0x492   : > { %1395 = vmatpush1.bf16.msra.mxu1 %v1223_v45 }
 0x493   : > { %v1219_v0 = vpop.permute.xlu0 %1218  ;;  %v1269_v6 = vpop.permute.xlu1 %1268 }
 0x494   : > { %v1225_v1 = vsel %vm1222_vm13, %v1217_v27, %v1219_v0  ;;  %v1226_v46 = vsel %vm1222_vm13, %v1219_v0, %v1221_v5 }
 0x495   : > { %1396 = vmatprep.subr.bf16.mxu1 %v1226_v46 }
 0x496   : > { %1397 = vmatpush1.bf16.msra.mxu1 %v1225_v1 }
 0x497   : > { %v1292_v35 = vpop.permute.xlu0 %1291  ;;  %1398 = vmatprep.subr.bf16.mxu1 %v1245_v34  ;;  %v1286_v36 = vpop.permute.xlu1 %1285 }
 0x498   : > { %v1298_v11 = vsel %vm1297_vm0, %v1286_v36, %v1288_v38 }
 0x49a   : > { %1399 = vmatpush1.bf16.msra.mxu1 %v1244_v37 }
 0x49b   : > { %v1311_v49 = vpop.permute.xlu0 %1310  ;;  %1400 = vmatprep.subr.bf16.mxu1 %v1247_v47  ;;  %v1296_v53 = vpop.permute.xlu1 %1295 }
 0x49e   : > { %1401 = vmatpush1.bf16.msra.mxu1 %v1246_v54 }
 0x49f   : > { %v1336_v56 = vpop.permute.xlu0 %1335  ;;  %1402 = vmatprep.subr.bf16.mxu1 %v1272_v55  ;;  %v1309_v52 = vpop.permute.xlu1 %1308 }
 0x4a0   : > { %v1320_v20 = vsel %vm1318_vm3, %v1309_v52, %v1311_v49 }
 0x4a2   : > { %1403 = vmatpush1.bf16.msra.mxu1 %v1271_v58 }
 0x4a3   : > { %v1267_v50 = vpop.permute.xlu0 %1266  ;;  %v1307_v57 = vpop.permute.xlu1 %1306 }
 0x4a4   : > { %v1273_v60 = vsel %vm1270_vm15, %v1265_v31, %v1267_v50  ;;  %v1274_v63 = vsel %vm1270_vm15, %v1267_v50, %v1269_v6  ;;  %v1319_v26 = vsel %vm1318_vm3, %v1307_v57, %v1309_v52 }
 0x4a5   : > { %1404 = vmatprep.subr.bf16.mxu1 %v1274_v63 }
 0x4a6   : > { %1405 = vmatpush1.bf16.msra.mxu1 %v1273_v60 }
 0x4a7   : > { %v1334_v8 = vpop.permute.xlu0 %1333  ;;  %1406 = vmatprep.subr.bf16.mxu1 %v1299_v2  ;;  %v1338_v62 = vpop.permute.xlu1 %1337 }
 0x4a8   : > { %v1346_v10 = vsel %vm1345_vm1, %v1334_v8, %v1336_v56  ;;  %v1347_v7 = vsel %vm1345_vm1, %v1336_v56, %v1338_v62 }
 0x4a9   : > { %1425 = vmatprep.subr.bf16.mxu0 %v1347_v7 }
 0x4aa   : > { %1407 = vmatpush1.bf16.msra.mxu1 %v1298_v11  ;;  %1426 = vmatpush1.bf16.msra.mxu0 %v1346_v10 }
 0x4ab   : > { %v1294_v13 = vpop.permute.xlu0 %1293  ;;  %v1315_v15 = vpop.permute.xlu1 %1314 }
 0x4ac   : > { %v1300_v17 = vsel %vm1297_vm0, %v1292_v35, %v1294_v13  ;;  %v1301_v19 = vsel %vm1297_vm0, %v1294_v13, %v1296_v53 }
 0x4ad   : > { %1408 = vmatprep.subr.bf16.mxu1 %v1301_v19 }
 0x4ae   : > { %1409 = vmatpush1.bf16.msra.mxu1 %v1300_v17 }
 0x4af   : > { %v1317_v21 = vpop.permute.xlu0 %1316  ;;  %1410 = vmatprep.subr.bf16.mxu1 %v1320_v20  ;;  %v1313_v23 = vpop.permute.xlu1 %1312 }
 0x4b0   : > { %v1322_v27 = vsel %vm1318_vm3, %v1315_v15, %v1317_v21  ;;  %v1321_v32 = vsel %vm1318_vm3, %v1313_v23, %v1315_v15 }
 0x4b2   : > { %1411 = vmatpush1.bf16.msra.mxu1 %v1319_v26 }
 0x4b3   : > { %v1342_v29 = vpop.permute.xlu0 %1341  ;;  %1412 = vmatprep.subr.bf16.mxu1 %v1322_v27  ;;  %v1344_v30 = vpop.permute.xlu1 %1343 }
 0x4b4   : > { %v1349_v31 = vsel %vm1345_vm1, %v1342_v29, %v1344_v30 }
 0x4b5   : > { %1427 = vmatprep.subr.bf16.mxu0 %v1349_v31 }
 0x4b6   : > { %1413 = vmatpush1.bf16.msra.mxu1 %v1321_v32 }
 0x4b7   : > { %v1340_v38 = vpop.permute.xlu0 %1339 }
 0x4b8   : > { %v1348_v39 = vsel %vm1345_vm1, %v1340_v38, %v1342_v29 }
 0x4b9   : > { %1415 = vmatmul.mubr.bf16.vlgmr.msra.gmra.mrb[4].mxu1 %v2330_v33  ;;  %1428 = vmatpush1.bf16.msra.mxu0 %v1348_v39 }
 0x4bc   : > { %2169 = vmatmul.mubr.msk.bf16.vlgmr.msra.gmra.mrb[8].mxu0 %vm718_vm2, %v2333_v40  ;;  %vm1476_vm2 = vcmask 1043456  }
 0x4c4   : > { %v1357_v43 = vpop.permute.xlu1 %1356 }
 0x4c8   : > { %v1362_v0 = vpop.permute.xlu0 %1361 }
 0x58c   : > { %v1416_v22 = vpop.f32.mrb[4].mxu1 }
 0x58d   : > { %v1417_v5 = vadd.f32 %v1416_v22, %v1357_v43  ;;  %v1418_v45 = vpop.f32.mrb[5].mxu1 }
 0x58e   : > { %v1419_v6 = vadd.f32 %v1418_v45, %v1357_v43  ;;  %v1420_v1 = vpop.f32.mrb[6].mxu1 }
 0x58f   : > { %v1421_v46 = vadd.f32 %v1420_v1, %v1362_v0  ;;  %v1422_v34 = vpop.f32.mrb[7].mxu1  ;;  %v1459_v35 = vpop.f32.mrb[8].mxu0 }
 0x590   : > { %v1423_v36 = vadd.f32 %v1422_v34, %v1362_v0  ;;  %v1460_v37 = vadd.f32 %v1459_v35, %v1417_v5  ;;  %v1461_v47 = vpop.f32.mrb[9].mxu0 }
 0x591   : > { %v1462_v49 = vadd.f32 %v1461_v47, %v1419_v6  ;;  %v1463_v53 = vpop.f32.mrb[10].mxu0 }
 0x592   : > { %v1464_v54 = vadd.f32 %v1463_v53, %v1421_v46  ;;  %v1465_v55 = vpop.f32.mrb[11].mxu0 }
 0x593   : > { %v1466_v56 = vadd.f32 %v1465_v55, %v1423_v36  ;;  %v1468_v52 = vadd.f32 %v1462_v49, %v1460_v37 }
 0x595   : > { %1469 = vadd.xlane.f32.xlu1 %v1468_v52  ;;  %v1471_v58 = vadd.f32 %v1466_v56, %v1464_v54 }
 0x597   : > { %1472 = vadd.xlane.f32.xlu0 %v1471_v58 }
 0x622   : > { %v1470_v50 = vpop.xlane.xlu1 %1469 }
 0x623   : > { %v1474_v57 = vmul.f32 0.00390625, %v1470_v50 }
 0x624   : > { %v1473_v60 = vpop.xlane.xlu0 %1472 }
 0x625   : > { %v1477_v63 = vsel %vm1476_vm2, %v1474_v57, 0.0  ;;  %v1487_v2 = vrot.slane %v1474_v57, 4  ;;  %v1475_v8 = vmul.f32 0.00390625, %v1473_v60 }
 0x626   : > { %v1478_v62 = vrot.slane %v1477_v63, 4 }
 0x627   : > { %v1489_v10 = vsel %vm1476_vm2, %v1487_v2, 0.0  ;;  %v1497_v7 = vsel %vm1476_vm2, %v1475_v8, 0.0  ;;  %v1506_v11 = vrot.slane %v1475_v8, 4 }
 0x628   : > { %v1479_v13 = vadd.f32 %v1478_v62, %v1477_v63  ;;  %v1490_v15 = vrot.slane %v1489_v10, 4  ;;  %v1498_v17 = vrot.slane %v1497_v7, 4 }
 0x629   : > { %v1508_v19 = vsel %vm1476_vm2, %v1506_v11, 0.0 }
 0x62a   : > { %v1480_v20 = vrot.slane %v1479_v13, 2  ;;  %v1491_v21 = vadd.f32 %v1490_v15, %v1489_v10  ;;  %v1499_v23 = vadd.f32 %v1498_v17, %v1497_v7  ;;  %v1509_v26 = vrot.slane %v1508_v19, 4 }
 0x62c   : > { %v1481_v27 = vadd.f32 %v1480_v20, %v1479_v13  ;;  %v1492_v29 = vrot.slane %v1491_v21, 2  ;;  %v1500_v30 = vrot.slane %v1499_v23, 2  ;;  %v1510_v31 = vadd.f32 %v1509_v26, %v1508_v19 }
 0x62e   : > { %v1482_v32 = vrot.slane %v1481_v27, 1  ;;  %v1493_v33 = vadd.f32 %v1492_v29, %v1491_v21  ;;  %v1501_v38 = vadd.f32 %v1500_v30, %v1499_v23  ;;  %v1511_v39 = vrot.slane %v1510_v31, 2 }
 0x630   : > { %v1502_v40 = vrot.slane %v1501_v38, 1  ;;  %v1512_v43 = vadd.f32 %v1511_v39, %v1510_v31  ;;  %v1483_v22 = vadd.f32 %v1482_v32, %v1481_v27  ;;  %v1494_v5 = vrot.slane %v1493_v33, 1 }
 0x632   : > { %v1495_v45 = vadd.f32 %v1494_v5, %v1493_v33  ;;  %v1503_v0 = vadd.f32 %v1502_v40, %v1501_v38  ;;  %v1513_v6 = vrot.slane %v1512_v43, 1  ;;  %v1485_v1 = vmul.f32 0.25, %v1483_v22 }
 0x634   : > { %v1496_v46 = vmul.f32 0.25, %v1495_v45  ;;  %v1514_v34 = vadd.f32 %v1513_v6, %v1512_v43  ;;  %v1504_v36 = vmul.f32 0.25, %v1503_v0 }
 0x636   : > { %v1516_v35 = vsel %vm1476_vm2, %v1485_v1, %v1496_v46  ;;  %v1515_v47 = vmul.f32 0.25, %v1514_v34 }
 0x637   : > { %1520 = vperm.xlu0 %2312, %v1516_v35  }
 0x638   : > { %v1517_v53 = vsel %vm1476_vm2, %v1504_v36, %v1515_v47 }
 0x639   : > { %1525 = vperm.xlu1 %2313, %v1517_v53  }
 0x6b6   : > { %v1521_v55 = vpop.permute.xlu0 %1520 }
 0x6b7   : > { %v3175_v52 = vsub.f32 %v1460_v37, %v1521_v55  ;;  %v3177_v58 = vsub.f32 %v1462_v49, %v1521_v55 }
 0x6b8   : > { %v1526_v50 = vpop.permute.xlu1 %1525 }
 0x6b9   : > { %v3179_v57 = vsub.f32 %v1464_v54, %v1526_v50  ;;  %v3181_v60 = vsub.f32 %v1466_v56, %v1526_v50  ;;  %v1532_v63 = vmul.f32 %v3175_v52, %v3175_v52  ;;  %v1533_v2 = vmul.f32 %v3177_v58, %v3177_v58  ;;  %v585_v54 = vld [vmem:[%s3393_s9] sm:$0xff]  ;;  %v586_v56 = vld [vmem:[%s3393_s9 + $0x8] sm:$0xff] }
 0x6bb   : > { %v1536_v8 = vadd.f32 %v1533_v2, %v1532_v63  ;;  %v1534_v62 = vmul.f32 %v3179_v57, %v3179_v57  ;;  %v1535_v37 = vmul.f32 %v3181_v60, %v3181_v60 }
 0x6bd   : > { %1537 = vadd.xlane.f32.xlu1 %v1536_v8  ;;  %v1539_v49 = vadd.f32 %v1535_v37, %v1534_v62 }
 0x6bf   : > { %1540 = vadd.xlane.f32.xlu0 %v1539_v49 }
 0x6ce   : > { %1604 = vperm.xlu1 %2313, %v585_v54  }
 0x6d5   : > { %1609 = vperm.xlu0 %2312, %v586_v56  }
 0x74a   : > { %v1538_v10 = vpop.xlane.xlu1 %1537 }
 0x74b   : > { %v1542_v7 = vmul.f32 0.00390625, %v1538_v10 }
 0x74c   : > { %v1541_v11 = vpop.xlane.xlu0 %1540 }
 0x74d   : > { %v1544_v13 = vsel %vm1476_vm2, %v1542_v7, 0.0  ;;  %v1553_v15 = vrot.slane %v1542_v7, 4  ;;  %v1543_v17 = vmul.f32 0.00390625, %v1541_v11  ;;  %v588_v7 = vld [vmem:[%s3394_s10 + $0x8] sm:$0xff]  ;;  %v587_v11 = vld [vmem:[%s3394_s10] sm:$0xff] }
 0x74e   : > { %v1545_v19 = vrot.slane %v1544_v13, 4 }
 0x74f   : > { %v1555_v20 = vsel %vm1476_vm2, %v1553_v15, 0.0  ;;  %v1563_v21 = vsel %vm1476_vm2, %v1543_v17, 0.0  ;;  %v1572_v23 = vrot.slane %v1543_v17, 4  ;;  %v1605_v15 = vpop.permute.xlu1 %1604 }
 0x750   : > { %v1546_v26 = vadd.f32 %v1545_v19, %v1544_v13  ;;  %v1556_v27 = vrot.slane %v1555_v20, 4  ;;  %v1564_v29 = vrot.slane %v1563_v21, 4 }
 0x751   : > { %v1574_v30 = vsel %vm1476_vm2, %v1572_v23, 0.0 }
 0x752   : > { %v1547_v31 = vrot.slane %v1546_v26, 2  ;;  %v1557_v32 = vadd.f32 %v1556_v27, %v1555_v20  ;;  %v1565_v33 = vadd.f32 %v1564_v29, %v1563_v21  ;;  %v1575_v38 = vrot.slane %v1574_v30, 4 }
 0x754   : > { %v1548_v39 = vadd.f32 %v1547_v31, %v1546_v26  ;;  %v1558_v40 = vrot.slane %v1557_v32, 2  ;;  %v1566_v43 = vrot.slane %v1565_v33, 2  ;;  %v1576_v22 = vadd.f32 %v1575_v38, %v1574_v30  ;;  %v1610_v13 = vpop.permute.xlu0 %1609 }
 0x756   : > { %v1549_v5 = vrot.slane %v1548_v39, 1  ;;  %v1559_v45 = vadd.f32 %v1558_v40, %v1557_v32  ;;  %v1567_v0 = vadd.f32 %v1566_v43, %v1565_v33  ;;  %v1577_v6 = vrot.slane %v1576_v22, 2 }
 0x758   : > { %v1550_v1 = vadd.f32 %v1549_v5, %v1548_v39  ;;  %v1560_v46 = vrot.slane %v1559_v45, 1  ;;  %v1568_v34 = vrot.slane %v1567_v0, 1  ;;  %v1578_v35 = vadd.f32 %v1577_v6, %v1576_v22 }
 0x75a   : > { %v1561_v36 = vadd.f32 %v1560_v46, %v1559_v45  ;;  %v1569_v47 = vadd.f32 %v1568_v34, %v1567_v0  ;;  %v1579_v53 = vrot.slane %v1578_v35, 1  ;;  %v1551_v55 = vmul.f32 0.25, %v1550_v1 }
 0x75c   : > { %v1562_v50 = vmul.f32 0.25, %v1561_v36  ;;  %v1580_v63 = vadd.f32 %v1579_v53, %v1578_v35  ;;  %v1570_v8 = vmul.f32 0.25, %v1569_v47 }
 0x75e   : > { %v1582_v2 = vsel %vm1476_vm2, %v1551_v55, %v1562_v50  ;;  %v1581_v62 = vmul.f32 0.25, %v1580_v63 }
 0x75f   : > { %v1584_v37 = vadd.f32 1e-05, %v1582_v2 }
 0x760   : > { %v1583_v49 = vsel %vm1476_vm2, %v1570_v8, %v1581_v62 }
 0x761   : > { %2353 = vrsqrt.f32 %v1584_v37  ;;  %v1585_v54 = vadd.f32 1e-05, %v1583_v49 }
 0x763   : > { %2355 = vrsqrt.f32 %v1585_v54 }
 0x76b   : > { %v2354_v56 = vpop.eup %2353 }
 0x76c   : > { %1590 = vperm.xlu0 %2312, %v2354_v56  }
 0x76d   : > { %v2356_v10 = vpop.eup %2355 }
 0x76e   : > { %1595 = vperm.xlu1 %2313, %v2356_v10  }
 0x770   : > { %1623 = vperm.xlu0 %2312, %v588_v7  }
 0x772   : > { %1618 = vperm.xlu1 %2313, %v587_v11  }
 0x7eb   : > { %v1591_v17 = vpop.permute.xlu0 %1590 }
 0x7ec   : > { %v1598_v19 = vmul.f32 %v1591_v17, %v3175_v52  ;;  %v1599_v20 = vmul.f32 %v1591_v17, %v3177_v58 }
 0x7ed   : > { %v1596_v21 = vpop.permute.xlu1 %1595 }
 0x7ee   : > { %v1600_v23 = vmul.f32 %v1596_v21, %v3179_v57  ;;  %v1601_v26 = vmul.f32 %v1596_v21, %v3181_v60  ;;  %v1612_v30 = vmul.f32 %v1605_v15, %v1598_v19  ;;  %v1613_v31 = vmul.f32 %v1605_v15, %v1599_v20 }
 0x7ef   : > { %v1624_v32 = vpop.permute.xlu0 %1623 }
 0x7f0   : > { %v1614_v27 = vmul.f32 %v1610_v13, %v1600_v23  ;;  %v1615_v29 = vmul.f32 %v1610_v13, %v1601_v26 }
 0x7f1   : > { %v1619_v33 = vpop.permute.xlu1 %1618 }
 0x7f2   : > { %v1628_v38 = vadd.f32 %v1624_v32, %v1614_v27  ;;  %v1629_v39 = vadd.f32 %v1624_v32, %v1615_v29  ;;  %v1626_v40 = vadd.f32 %v1619_v33, %v1612_v30  ;;  %v1627_v43 = vadd.f32 %v1619_v33, %v1613_v31 }
 0x7f4   : > { %v1632_v22 = vmul.f32 0.2, %v1628_v38  ;;  %v1633_v5 = vmul.f32 0.2, %v1629_v39  ;;  %v1630_v52 = vmul.f32 0.2, %v1626_v40 }
 0x7f5   : > { %v1631_v45 = vmul.f32 0.2, %v1627_v43 }
 0x7f6   : > { %v1636_v58 = vmax.f32 %v1628_v38, %v1632_v22  ;;  %v1637_v0 = vmax.f32 %v1629_v39, %v1633_v5  ;;  %v1634_v6 = vmax.f32 %v1626_v40, %v1630_v52 }
 0x7f7   : > { %v1635_v57 = vmax.f32 %v1627_v43, %v1631_v45 }
 0x7f8   : > { %v1638_v1 = vpack.c.bf16 %v1636_v58, %v1634_v6 }
 0x7f9   : > { %v1639_v60 = vpack.c.bf16 %v1637_v0, %v1635_v57 }
 0x7fa   : > { %1642 = vrot.lane.b32.xlu1 %v1638_v1, %s2533_s17 }
 0x7fb   : > { %1644 = vrot.lane.b32.xlu0 %v1639_v60, %s2533_s17 }
 0x86c   : > { %v1643_v46 = vpop.permute.xlu1 %1642 }
 0x86d   : > { %v1645_v34 = vpop.permute.xlu0 %1644  ;;  %1650 = vst.msk [vmem:[#allocation2] sm:$0xff] %vm946_vm7, %v1643_v46 }
 0x86e   : > { %1652 = vst.msk [vmem:[#allocation2 + $0x10] sm:$0xff] %vm595_vm5, %v1645_v34  ;;  %v1646_v35 = vsel %vm595_vm5, %v1643_v46, %v1645_v34 }
 0x86f   : > { %v1656_v36 = vmul.bf16 %v1646_v35, %v2933_v48  ;;  %v1659_v2 = vmul.bf16 %v1646_v35, %v3004_v14  ;;  %v1668_v8 = vmul.bf16 %v1646_v35, %v3051_v28 }
 0x871   : > { %1794 = vmatprep.subr.bf16.mxu0 %v1656_v36 }
 0x874   : > { %v1653_v47 = vld [vmem:[#allocation2] sm:$0xff] }
 0x875   : > { %v1657_v53 = vld [vmem:[#allocation2 + $0x10] sm:$0xff]  ;;  %1676 = vrot.lane.b32.xlu1 %v1653_v47, %s2534_s11  ;;  %v1655_v55 = vmul.bf16 %v1653_v47, %v2939_v51  ;;  %v1658_v50 = vmul.bf16 %v1653_v47, %v2964_v61  ;;  %v1661_v51 = vmul.bf16 %v1653_v47, %v2981_v4  ;;  %v1664_v61 = vmul.bf16 %v1653_v47, %v2995_v12 }
 0x876   : > { %1680 = vrot.lane.b32.xlu0 %v1657_v53, %s2534_s11  ;;  %v1660_v48 = vmul.bf16 %v1657_v53, %v2960_v59  ;;  %v1663_v63 = vmul.bf16 %v1657_v53, %v2976_v3  ;;  %v1662_v59 = vmul.bf16 %v1646_v35, %v3014_v16  ;;  %v1666_v3 = vmul.bf16 %v1657_v53, %v2989_v9 }
 0x877   : > { %1795 = vmatpush1.bf16.msra.mxu0 %v1655_v55  ;;  %v1669_v4 = vmul.bf16 %v1657_v53, %v3043_v25  ;;  %v1667_v14 = vmul.bf16 %v1653_v47, %v3039_v24  ;;  %v1665_v12 = vmul.bf16 %v1646_v35, %v3023_v18  ;;  %v1671_v16 = vmul.bf16 %v1646_v35, %v3084_v44 }
 0x878   : > { %v1672_v18 = vmul.bf16 %v1657_v53, %v3079_v42  ;;  %v1670_v24 = vmul.bf16 %v1653_v47, %v3075_v41 }
 0x879   : > { %1716 = vrot.lane.b32.xlu1 %v1657_v53, %s2535_s12 }
 0x87a   : > { %1714 = vrot.lane.b32.xlu0 %v1646_v35, %s2535_s12 }
 0x87d   : > { %1678 = vrot.lane.b32.xlu1 %v1646_v35, %s2534_s11  ;;  %s3446_s11 = sld [smem:[#allocation23_spill]] }
 0x87e   : > { %1689 = vrot.lane.b32.xlu0 %v1658_v50, %s2536_s29 }
 0x881   : > { %1693 = vrot.lane.b32.xlu1 %v1660_v48, %s2536_s29 }
 0x882   : > { %1706 = vrot.lane.b32.xlu0 %v1663_v63, %s2537_s14 }
 0x885   : > { %1702 = vrot.lane.b32.xlu1 %v1661_v51, %s2537_s14 }
 0x886   : > { %1691 = vrot.lane.b32.xlu0 %v1659_v2, %s2536_s29  ;;  %s2542_s29 = smov [#allocation9]  }
 0x889   : > { %1725 = vrot.lane.b32.xlu1 %v1664_v61, %s2538_s26 }
 0x88a   : > { %1712 = vrot.lane.b32.xlu0 %v1653_v47, %s2535_s12  ;;  %s3443_s12 = sld [smem:[#allocation20_spill]] }
 0x88d   : > { %1704 = vrot.lane.b32.xlu1 %v1662_v59, %s2537_s14  ;;  %s2451_s14 = sshll.u32 %s2542_s29, 4  ;;  %s2452_s14 = int_to_ptr.vmem [resolvable:$false] %s2451_s14 }
 0x88e   : > { %1729 = vrot.lane.b32.xlu0 %v1666_v3, %s2538_s26 }
 0x890   : > { %v2334_v9 = vld [vmem:[%s3443_s12 + $0x4] ss:$8 sps:$4 sm:$0xff]   ;;  %v2336_v34 = vld [vmem:[%s3443_s12] ss:$8 sps:$4 sm:$0xff]  }
 0x891   : > { %1742 = vrot.lane.b32.xlu1 %v1669_v4, %s2539_s25  ;;  %2172 = vmatprep.mubr.msk.bf16.mxu0 %vm1053_vm8, %v2334_v9 }
 0x892   : > { %1738 = vrot.lane.b32.xlu0 %v1667_v14, %s2539_s25 }
 0x895   : > { %1727 = vrot.lane.b32.xlu1 %v1665_v12, %s2538_s26  ;;  %s3444_s26 = sld [smem:[#allocation21_spill]] }
 0x896   : > { %1740 = vrot.lane.b32.xlu0 %v1668_v8, %s2539_s25  ;;  %s2139_s25 = sshll.u32 %s2799_s20, 5 }
 0x897   : > { %s554_s13 = scalar_lea.vmem [#allocation9], %s2139_s25  ;;  %s2453_s25 = scalar_lea.vmem %s2452_s14, 1024 }
 0x899   : > { %1750 = vrot.lane.b32.xlu1 %v1646_v35, %s2540_s28 }
 0x89a   : > { %1752 = vrot.lane.b32.xlu0 %v1657_v53, %s2540_s28 }
 0x89b   : > { %v589_v25 = vld [vmem:[%s3444_s26] sm:$0xff]  ;;  %v590_v28 = vld [vmem:[%s3444_s26 + $0x8] sm:$0xff] }
 0x89d   : > { %1748 = vrot.lane.b32.xlu1 %v1653_v47, %s2540_s28  ;;  %s2023_s28 = sshll.u32 %s554_s13, 4  ;;  %s3334_s28 = int_to_ptr.vmem [resolvable:$true] %s2023_s28 }
 0x89e   : > { %1763 = vrot.lane.b32.xlu0 %v1671_v16, %s2541_s15  ;;  %s2447_s17 = scalar_lea.vmem %s3334_s28, 512  ;;  %p2454_p0 = scmp.lt.s32.totalorder %s3334_s28, %s2452_s14 }
 0x89f   : > { %p2448_p4 = scmp.ne.s32.totalorder %s3334_s28, %s2447_s17  ;;  %p2455_p9 = scmp.lt.s32.totalorder %s2453_s25, %s2447_s17 }
 0x8a1   : > { %1765 = vrot.lane.b32.xlu1 %v1672_v18, %s2541_s15  ;;  %p2449_p10 = pnand %p2448_p4, %p3449_p5  ;;  %p2456_p6 = por %p2455_p9, %p2454_p0 }
 0x8a2   : > { %1761 = vrot.lane.b32.xlu0 %v1670_v24, %s2541_s15  ;;  %s2180_s15 = sshll.u32 %s2645_s22, 9  ;;  %s2010_s22 = scalar_lea.sflag [#allocation5], %s2799_s20 }
 0x8a3   : > { %s3339_s16 = scalar_lea.hbm %s3448_s23, %s2180_s15  ;;  %p2450_p2 = pneg %p2449_p10 }
 0x8a5   : > { %1773 = vperm.xlu1 %2313, %v589_v25   ;;  %p2457_p12 = pnand %p2456_p6, %p2450_p2 }
 0x8a6   : > { %1778 = vperm.xlu0 %2312, %v590_v28  }
 0x8e7   : > { %v1677_v44 = vpop.permute.xlu1 %1676 }
 0x8e8   : > { %v1681_v62 = vpop.permute.xlu0 %1680 }
 0x8eb   : > { %v1717_v37 = vpop.permute.xlu1 %1716 }
 0x8ec   : > { %v1715_v42 = vpop.permute.xlu0 %1714 }
 0x8ed   : > { %v1719_v29 = vsel %vm1243_vm14, %v1715_v42, %v1717_v37 }
 0x8ef   : > { %v1679_v49 = vpop.permute.xlu1 %1678 }
 0x8f0   : > { %v1690_v41 = vpop.permute.xlu0 %1689  ;;  %v1682_v54 = vsel %vm1168_vm11, %v1677_v44, %v1679_v49  ;;  %v1683_v56 = vsel %vm1168_vm11, %v1679_v49, %v1681_v62 }
 0x8f1   : > { %1796 = vmatprep.subr.bf16.mxu0 %v1683_v56 }
 0x8f2   : > { %1797 = vmatpush1.bf16.msra.mxu0 %v1682_v54 }
 0x8f3   : > { %v1694_v10 = vpop.permute.xlu1 %1693 }
 0x8f4   : > { %v1707_v7 = vpop.permute.xlu0 %1706 }
 0x8f7   : > { %v1703_v11 = vpop.permute.xlu1 %1702 }
 0x8f8   : > { %v1692_v13 = vpop.permute.xlu0 %1691 }
 0x8f9   : > { %v1695_v15 = vsel %vm1195_vm12, %v1690_v41, %v1692_v13  ;;  %v1696_v17 = vsel %vm1195_vm12, %v1692_v13, %v1694_v10 }
 0x8fa   : > { %1798 = vmatprep.subr.bf16.mxu0 %v1696_v17 }
 0x8fb   : > { %1799 = vmatpush1.bf16.msra.mxu0 %v1695_v15  ;;  %v1726_v19 = vpop.permute.xlu1 %1725 }
 0x8fc   : > { %v1713_v20 = vpop.permute.xlu0 %1712 }
 0x8fd   : > { %v1718_v32 = vsel %vm1243_vm14, %v1713_v20, %v1715_v42 }
 0x8ff   : > { %v1705_v21 = vpop.permute.xlu1 %1704 }
 0x900   : > { %v1708_v23 = vsel %vm1222_vm13, %v1703_v11, %v1705_v21  ;;  %v1730_v26 = vpop.permute.xlu0 %1729  ;;  %v1709_v27 = vsel %vm1222_vm13, %v1705_v21, %v1707_v7 }
 0x901   : > { %1800 = vmatprep.subr.bf16.mxu0 %v1709_v27 }
 0x902   : > { %1801 = vmatpush1.bf16.msra.mxu0 %v1708_v23 }
 0x903   : > { %v1743_v30 = vpop.permute.xlu1 %1742  ;;  %1802 = vmatprep.subr.bf16.mxu0 %v1719_v29 }
 0x904   : > { %v1739_v31 = vpop.permute.xlu0 %1738 }
 0x906   : > { %1803 = vmatpush1.bf16.msra.mxu0 %v1718_v32 }
 0x907   : > { %v1728_v33 = vpop.permute.xlu1 %1727 }
 0x908   : > { %v1731_v38 = vsel %vm1270_vm15, %v1726_v19, %v1728_v33  ;;  %v1741_v39 = vpop.permute.xlu0 %1740  ;;  %v1732_v40 = vsel %vm1270_vm15, %v1728_v33, %v1730_v26 }
 0x909   : > { %1804 = vmatprep.subr.bf16.mxu0 %v1732_v40  ;;  %v1745_v43 = vsel %vm1297_vm0, %v1741_v39, %v1743_v30  ;;  %v1744_v52 = vsel %vm1297_vm0, %v1739_v31, %v1741_v39 }
 0x90a   : > { %1805 = vmatpush1.bf16.msra.mxu0 %v1731_v38 }
 0x90b   : > { %v1751_v22 = vpop.permute.xlu1 %1750  ;;  %1806 = vmatprep.subr.bf16.mxu0 %v1745_v43 }
 0x90c   : > { %v1753_v5 = vpop.permute.xlu0 %1752 }
 0x90d   : > { %v1755_v45 = vsel %vm1318_vm3, %v1751_v22, %v1753_v5 }
 0x90e   : > { %1807 = vmatpush1.bf16.msra.mxu0 %v1744_v52 }
 0x90f   : > { %v1749_v58 = vpop.permute.xlu1 %1748  ;;  %1808 = vmatprep.subr.bf16.mxu0 %v1755_v45 }
 0x910   : > { %v1754_v0 = vsel %vm1318_vm3, %v1749_v58, %v1751_v22  ;;  %v1764_v6 = vpop.permute.xlu0 %1763 }
 0x912   : > { %1809 = vmatpush1.bf16.msra.mxu0 %v1754_v0 }
 0x913   : > { %v1766_v57 = vpop.permute.xlu1 %1765 }
 0x914   : > { %v1762_v1 = vpop.permute.xlu0 %1761  ;;  %v1768_v60 = vsel %vm1345_vm1, %v1764_v6, %v1766_v57 }
 0x915   : > { %v1767_v46 = vsel %vm1345_vm1, %v1762_v1, %v1764_v6  ;;  %1810 = vmatprep.subr.bf16.mxu0 %v1768_v60 }
 0x916   : > { %1811 = vmatpush1.bf16.msra.mxu0 %v1767_v46 }
 0x919   : > { %1827 = vmatmul.mubr.bf16.vlgmr.msra.gmra.mrb[12].mxu0 %v2336_v34 }
 0x924   : > { %v1774_v35 = vpop.permute.xlu1 %1773 }
 0x925   : > { %v1779_v55 = vpop.permute.xlu0 %1778 }
 0x9ec   : > { %v1828_v36 = vpop.f32.mrb[12].mxu0 }
 0x9ed   : > { %v1829_v47 = vadd.f32 %v1828_v36, %v1774_v35  ;;  %v1830_v53 = vpop.f32.mrb[13].mxu0  ;;  %v592_v36 = vld [vmem:[%s3445_s30 + $0x8] sm:$0xff] }
 0x9ee   : > { %v1831_v50 = vadd.f32 %v1830_v53, %v1774_v35  ;;  %v1832_v48 = vpop.f32.mrb[14].mxu0  ;;  %v591_v35 = vld [vmem:[%s3445_s30] sm:$0xff] }
 0x9ef   : > { %v1833_v63 = vadd.f32 %v1832_v48, %v1779_v55  ;;  %v1834_v51 = vpop.f32.mrb[15].mxu0 }
 0x9f0   : > { %v1837_v2 = vadd.f32 %v1831_v50, %v1829_v47  ;;  %v1835_v61 = vadd.f32 %v1834_v51, %v1779_v55 }
 0x9f2   : > { %v1840_v59 = vadd.f32 %v1835_v61, %v1833_v63  ;;  %1838 = vadd.xlane.f32.xlu1 %v1837_v2 }
 0x9f4   : > { %1841 = vadd.xlane.f32.xlu0 %v1840_v59 }
 0xa7f   : > { %v1839_v3 = vpop.xlane.xlu1 %1838 }
 0xa80   : > { %v1843_v4 = vmul.f32 0.00390625, %v1839_v3 }
 0xa81   : > { %v1842_v14 = vpop.xlane.xlu0 %1841 }
 0xa82   : > { %v1845_v12 = vsel %vm1476_vm2, %v1843_v4, 0.0  ;;  %v1854_v8 = vrot.slane %v1843_v4, 4  ;;  %v1844_v9 = vmul.f32 0.00390625, %v1842_v14 }
 0xa83   : > { %v1846_v16 = vrot.slane %v1845_v12, 4 }
 0xa84   : > { %v1856_v18 = vsel %vm1476_vm2, %v1854_v8, 0.0  ;;  %v1864_v24 = vsel %vm1476_vm2, %v1844_v9, 0.0  ;;  %v1873_v25 = vrot.slane %v1844_v9, 4 }
 0xa85   : > { %v1847_v28 = vadd.f32 %v1846_v16, %v1845_v12  ;;  %v1857_v44 = vrot.slane %v1856_v18, 4  ;;  %v1865_v62 = vrot.slane %v1864_v24, 4 }
 0xa86   : > { %v1875_v37 = vsel %vm1476_vm2, %v1873_v25, 0.0 }
 0xa87   : > { %v1848_v42 = vrot.slane %v1847_v28, 2  ;;  %v1858_v49 = vadd.f32 %v1857_v44, %v1856_v18  ;;  %v1866_v41 = vadd.f32 %v1865_v62, %v1864_v24  ;;  %v1876_v54 = vrot.slane %v1875_v37, 4 }
 0xa89   : > { %v1849_v56 = vadd.f32 %v1848_v42, %v1847_v28  ;;  %v1859_v10 = vrot.slane %v1858_v49, 2  ;;  %v1867_v7 = vrot.slane %v1866_v41, 2  ;;  %v1877_v11 = vadd.f32 %v1876_v54, %v1875_v37 }
 0xa8b   : > { %v1850_v13 = vrot.slane %v1849_v56, 1  ;;  %v1860_v15 = vadd.f32 %v1859_v10, %v1858_v49  ;;  %v1868_v17 = vadd.f32 %v1867_v7, %v1866_v41  ;;  %v1878_v19 = vrot.slane %v1877_v11, 2 }
 0xa8d   : > { %v1851_v20 = vadd.f32 %v1850_v13, %v1849_v56  ;;  %v1861_v21 = vrot.slane %v1860_v15, 1  ;;  %v1869_v23 = vrot.slane %v1868_v17, 1  ;;  %v1879_v26 = vadd.f32 %v1878_v19, %v1877_v11 }
 0xa8f   : > { %v1870_v27 = vadd.f32 %v1869_v23, %v1868_v17  ;;  %v1880_v29 = vrot.slane %v1879_v26, 1  ;;  %v1862_v30 = vadd.f32 %v1861_v21, %v1860_v15  ;;  %v1852_v31 = vmul.f32 0.25, %v1851_v20 }
 0xa91   : > { %v1863_v32 = vmul.f32 0.25, %v1862_v30  ;;  %v1881_v33 = vadd.f32 %v1880_v29, %v1879_v26  ;;  %v1871_v39 = vmul.f32 0.25, %v1870_v27 }
 0xa93   : > { %v1883_v38 = vsel %vm1476_vm2, %v1852_v31, %v1863_v32  ;;  %v1882_v40 = vmul.f32 0.25, %v1881_v33  ;;  %v594_v32 = vld [vmem:[%s3446_s11 + $0x8] sm:$0xff]  ;;  %v593_v33 = vld [vmem:[%s3446_s11] sm:$0xff] }
 0xa94   : > { %1887 = vperm.xlu0 %2312, %v1883_v38  }
 0xa95   : > { %v1884_v43 = vsel %vm1476_vm2, %v1871_v39, %v1882_v40 }
 0xa96   : > { %1892 = vperm.xlu1 %2313, %v1884_v43  }
 0xb13   : > { %v1888_v22 = vpop.permute.xlu0 %1887 }
 0xb14   : > { %v3294_v5 = vsub.f32 %v1829_v47, %v1888_v22  ;;  %v3296_v52 = vsub.f32 %v1831_v50, %v1888_v22 }
 0xb15   : > { %v1893_v45 = vpop.permute.xlu1 %1892 }
 0xb16   : > { %v1899_v58 = vmul.f32 %v3294_v5, %v3294_v5  ;;  %v1900_v0 = vmul.f32 %v3296_v52, %v3296_v52  ;;  %v3302_v6 = vsub.f32 %v1833_v63, %v1893_v45  ;;  %v3304_v57 = vsub.f32 %v1835_v61, %v1893_v45 }
 0xb18   : > { %v1901_v1 = vmul.f32 %v3302_v6, %v3302_v6  ;;  %v1902_v60 = vmul.f32 %v3304_v57, %v3304_v57  ;;  %v1903_v46 = vadd.f32 %v1900_v0, %v1899_v58 }
 0xb1a   : > { %1904 = vadd.xlane.f32.xlu1 %v1903_v46  ;;  %v1906_v34 = vadd.f32 %v1902_v60, %v1901_v1 }
 0xb1c   : > { %1907 = vadd.xlane.f32.xlu0 %v1906_v34 }
 0xb2b   : > { %1971 = vperm.xlu1 %2313, %v591_v35  }
 0xb32   : > { %1976 = vperm.xlu0 %2312, %v592_v36  }
 0xba7   : > { %v1905_v47 = vpop.xlane.xlu1 %1904 }
 0xba8   : > { %v1909_v53 = vmul.f32 0.00390625, %v1905_v47 }
 0xba9   : > { %v1908_v55 = vpop.xlane.xlu0 %1907 }
 0xbaa   : > { %v1911_v50 = vsel %vm1476_vm2, %v1909_v53, 0.0  ;;  %v1920_v48 = vrot.slane %v1909_v53, 4  ;;  %v1910_v63 = vmul.f32 0.00390625, %v1908_v55 }
 0xbab   : > { %v1912_v51 = vrot.slane %v1911_v50, 4  ;;  %v1972_v39 = vpop.permute.xlu1 %1971 }
 0xbac   : > { %v1922_v2 = vsel %vm1476_vm2, %v1920_v48, 0.0  ;;  %v1930_v61 = vsel %vm1476_vm2, %v1910_v63, 0.0  ;;  %v1939_v59 = vrot.slane %v1910_v63, 4 }
 0xbad   : > { %v1913_v3 = vadd.f32 %v1912_v51, %v1911_v50  ;;  %v1923_v4 = vrot.slane %v1922_v2, 4  ;;  %v1931_v14 = vrot.slane %v1930_v61, 4 }
 0xbae   : > { %v1941_v12 = vsel %vm1476_vm2, %v1939_v59, 0.0 }
 0xbaf   : > { %v1914_v8 = vrot.slane %v1913_v3, 2  ;;  %v1924_v9 = vadd.f32 %v1923_v4, %v1922_v2  ;;  %v1932_v16 = vadd.f32 %v1931_v14, %v1930_v61  ;;  %v1942_v18 = vrot.slane %v1941_v12, 4 }
 0xbb1   : > { %v1915_v24 = vadd.f32 %v1914_v8, %v1913_v3  ;;  %v1925_v25 = vrot.slane %v1924_v9, 2  ;;  %v1933_v28 = vrot.slane %v1932_v16, 2  ;;  %v1943_v44 = vadd.f32 %v1942_v18, %v1941_v12  ;;  %v1977_v38 = vpop.permute.xlu0 %1976 }
 0xbb3   : > { %v1916_v62 = vrot.slane %v1915_v24, 1  ;;  %v1926_v37 = vadd.f32 %v1925_v25, %v1924_v9  ;;  %v1934_v42 = vadd.f32 %v1933_v28, %v1932_v16  ;;  %v1944_v49 = vrot.slane %v1943_v44, 2 }
 0xbb5   : > { %v1917_v41 = vadd.f32 %v1916_v62, %v1915_v24  ;;  %v1927_v54 = vrot.slane %v1926_v37, 1  ;;  %v1935_v56 = vrot.slane %v1934_v42, 1  ;;  %v1945_v10 = vadd.f32 %v1944_v49, %v1943_v44 }
 0xbb7   : > { %v1928_v7 = vadd.f32 %v1927_v54, %v1926_v37  ;;  %v1936_v11 = vadd.f32 %v1935_v56, %v1934_v42  ;;  %v1946_v13 = vrot.slane %v1945_v10, 1  ;;  %v1918_v15 = vmul.f32 0.25, %v1917_v41 }
 0xbb9   : > { %v1929_v17 = vmul.f32 0.25, %v1928_v7  ;;  %v1947_v19 = vadd.f32 %v1946_v13, %v1945_v10  ;;  %v1937_v21 = vmul.f32 0.25, %v1936_v11 }
 0xbbb   : > { %v1949_v20 = vsel %vm1476_vm2, %v1918_v15, %v1929_v17  ;;  %v1948_v23 = vmul.f32 0.25, %v1947_v19 }
 0xbbc   : > { %v1951_v26 = vadd.f32 1e-05, %v1949_v20 }
 0xbbd   : > { %v1950_v27 = vsel %vm1476_vm2, %v1937_v21, %v1948_v23 }
 0xbbe   : > { %2357 = vrsqrt.f32 %v1951_v26  ;;  %v1952_v29 = vadd.f32 1e-05, %v1950_v27 }
 0xbc0   : > { %2359 = vrsqrt.f32 %v1952_v29 }
 0xbc8   : > { %v2358_v30 = vpop.eup %2357 }
 0xbc9   : > { %1957 = vperm.xlu0 %2312, %v2358_v30  }
 0xbca   : > { %v2360_v31 = vpop.eup %2359 }
 0xbcb   : > { %1962 = vperm.xlu1 %2313, %v2360_v31  }
 0xbcd   : > { %1990 = vperm.xlu0 %2312, %v594_v32  }
 0xbcf   : > { %1985 = vperm.xlu1 %2313, %v593_v33  }
 0xc48   : > { %v1958_v40 = vpop.permute.xlu0 %1957 }
 0xc49   : > { %v1965_v43 = vmul.f32 %v1958_v40, %v3294_v5  ;;  %v1966_v22 = vmul.f32 %v1958_v40, %v3296_v52 }
 0xc4a   : > { %v1963_v45 = vpop.permute.xlu1 %1962 }
 0xc4b   : > { %v1967_v58 = vmul.f32 %v1963_v45, %v3302_v6  ;;  %v1968_v0 = vmul.f32 %v1963_v45, %v3304_v57  ;;  %v1979_v46 = vmul.f32 %v1972_v39, %v1965_v43  ;;  %v1980_v34 = vmul.f32 %v1972_v39, %v1966_v22 }
 0xc4c   : > { %v1991_v35 = vpop.permute.xlu0 %1990 }
 0xc4d   : > { %v1981_v1 = vmul.f32 %v1977_v38, %v1967_v58  ;;  %v1982_v60 = vmul.f32 %v1977_v38, %v1968_v0 }
 0xc4e   : > { %v1986_v36 = vpop.permute.xlu1 %1985 }
 0xc4f   : > { %v1995_v47 = vadd.f32 %v1991_v35, %v1981_v1  ;;  %v1996_v53 = vadd.f32 %v1991_v35, %v1982_v60  ;;  %v1993_v55 = vadd.f32 %v1986_v36, %v1979_v46  ;;  %v1994_v50 = vadd.f32 %v1986_v36, %v1980_v34 }
 0xc51   : > { %v1999_v5 = vmul.f32 0.2, %v1995_v47  ;;  %v2000_v52 = vmul.f32 0.2, %v1996_v53  ;;  %v1997_v6 = vmul.f32 0.2, %v1993_v55 }
 0xc52   : > { %v1998_v48 = vmul.f32 0.2, %v1994_v50 }
 0xc53   : > { %v2003_v57 = vmax.f32 %v1995_v47, %v1999_v5  ;;  %v2004_v63 = vmax.f32 %v1996_v53, %v2000_v52  ;;  %v2001_v51 = vmax.f32 %v1993_v55, %v1997_v6 }
 0xc54   : > { %v2002_v2 = vmax.f32 %v1994_v50, %v1998_v48 }
 0xc55   : > { %2007 = vst [vmem:[%s554_s13 + $0x10] sm:$0xff] %v2003_v57  ;;  %2008 = vst [vmem:[%s554_s13 + $0x18] sm:$0xff] %v2004_v63 }
 0xc56   : > { %2005 = vst [vmem:[%s554_s13] sm:$0xff] %v2001_v51  ;;  %2006 = vst [vmem:[%s554_s13 + $0x8] sm:$0xff] %v2002_v2 }
 0xc57   : > { %2460 = shalt.err (!%p2457_p12)
}
 0xc58   : > { %s2461_s13 = scalar_lea.hbm %s3339_s16, 512  ;;  %s2465_s24 = scalar_lea.hbm %s3448_s23, 1024 }
 0xc59   : > { %p2462_p13 = scmp.ne.s32.totalorder %s3339_s16, %s2461_s13  ;;  %p2466_p3 = scmp.lt.u32.totalorder %s3339_s16, %s3448_s23 }
 0xc5a   : > { %p2467_p7 = scmp.lt.u32.totalorder %s2465_s24, %s2461_s13  ;;  %p2469_p4 = scmp.lt.u32.totalorder %s2461_s13, %s3339_s16 }
 0xc5b   : > { %p2463_p1 = pnand %p2462_p13, %p3449_p5 }
 0xc5c   : > { %p2468_p8 = por %p2467_p7, %p2466_p3 }
 0xc5d   : > { %p2464_p11 = pneg %p2463_p1 }
 0xc5e   : > { %p2470_p10 = por %p2469_p4, %p2468_p8 }
 0xc60   : > { %p2471_p2 = pnand %p2470_p10, %p2464_p11 }
 0xc62   : > { %2474 = shalt.err (!%p2471_p2)
}
 0xc63   : > { %s2543_s17 = smov 256  }
 0xc64   : > { %2234 = dma.vmem_to_hbm [thread:$0]  (%p3449_p5), %s3334_s28, 512, %s3339_s16, %s2010_s22, %s2543_s17, %s2543_s17, %s2529_s18  }
 0xc65 PF: > { %s3450_s25 = sld [smem:[#allocation13_spill]]  ;;  %s3451_s15 = sld [smem:[#allocation18_spill]] }
 0xc66   : > { %p3453_p9 = scmp.ge.s32.totalorder %s2517_s21, 2 }
 0xc6b   : > { %s2038_s27 = sand.u32 1, %s3450_s25   ;;  %p3452_p0 = scmp.ne.s32.totalorder %s3451_s15, 0 }
 0xc6c   : > { %s2039_s13 = scalar_lea.sflag [#allocation5], %s2038_s27 }
 0xc6d   : > { %p2248_p6 = pnand %p3453_p9, %p3452_p0 }
 0xc6f   : > { %2500 = dma.done.wait (!%p2248_p6), %s2039_s13, 512  }
 0xc70   : > { %2502 = vsyncadd (!%p2248_p6), %s2039_s13, 4294966784  ;;  %s3454_s21 = sld [smem:[#allocation15_spill]]  ;;  %s3455_s3 = sld [smem:[#allocation14_spill]] }
 0xc71   : > { %s3456_s20 = sld [smem:[#allocation16_spill]]  ;;  %s3457_s18 = smov %s2509_s19 }
 0xc76   : > { %p29_p12 = scmp.ge.s32.totalorder %s3454_s21, 4   ;;  %s3458_s19 = smov %s3455_s3 }
 0xc78   :  { %31 = sbr.rel (!%p29_p12) target bundleno = 13 (0xd), region = 136 }
 0xc7f   :  { %2044 = vsyncpa [#allocation4], 1 }
 0xc80   :  { %2046 = vsyncpa [#allocation4 + $0x1], 1 }
 0xc81   :  { %2047 = vsyncpa [#allocation7], 1 }
 0xc82   :  { %2048 = vsyncpa [#allocation5], 1 }
 0xc83   :  { %2050 = vsyncpa [#allocation5 + $0x1], 1 }

</bundles_post_ra>
